<compile_context>
chip_gen: v7x
topology: tpu7x:2x2x1
jax: 0.10.0
libtpu: 0.0.40
codegen_flags: <defaults>
</compile_context>

<pallas_src>
import functools
import math

import jax
import jax.numpy as jnp
from jax.experimental import pallas as pl
from jax.experimental.pallas import tpu as pltpu

INF = 10000000000.0


# ----------------------------- Pallas kernel ------------------------------ #
def encoder_stack_kernel(x0_ref, m_ref,
                         wqkv_ref, wo_ref, w1_ref, w2_ref,
                         bqkv_ref, b1_ref, vec_ref,
                         o_ref,
                         x_sc, cat_sc, neg_sc,
                         *, n_heads, inv_scale, eps=1e-6):
    """One grid step = one (batch-block, layer) pair of the encoder stack."""
    layer = pl.program_id(1)
    n_layers = pl.num_programs(1)

    Bb, T, D = x_sc.shape
    H = n_heads
    dh = D // H
    M = Bb * T

    # First layer of each batch block: load the embedded+positional input into
    # the resident activation scratch and precompute the key-mask penalty.
    @pl.when(layer == 0)
    def _():
        x_sc[...] = x0_ref[...]
        neg_sc[...] = (1.0 - m_ref[...]) * INF

    x3 = x_sc[...]                          # (Bb, T, D) f32, resident in VMEM
    xf = x3.reshape(M, D)                   # fold batch*seq into matmul M dim
    xb = xf.astype(jnp.bfloat16)            # bf16 MXU operands, f32 accumulate
    neg = neg_sc[...]                       # (Bb, 1, T) key-mask penalty

    vecs = vec_ref[0]                       # (6, D) packed: bo,b2,g1,be1,g2,be2
    bo, b2 = vecs[0:1, :], vecs[1:2, :]
    g1, be1 = vecs[2:3, :], vecs[3:4, :]
    g2, be2 = vecs[4:5, :], vecs[5:6, :]

    def mxu(a, b):
        return jnp.dot(a, b, preferred_element_type=jnp.float32)

    # --- multi-head self-attention ---------------------------------------- #
    # Fused lane-dense QKV projection: one (M,D)@(D,3D) matmul.
    qkv = mxu(xb, wqkv_ref[0]) + bqkv_ref[0]             # (M, 3D) f32

    for h in range(H):                      # static unroll over heads (toy H)
        q = qkv[:, h * dh:(h + 1) * dh].reshape(Bb, T, dh)
        k = qkv[:, D + h * dh:D + (h + 1) * dh].reshape(Bb, T, dh)
        v = qkv[:, 2 * D + h * dh:2 * D + (h + 1) * dh].reshape(Bb, T, dh)

        s = jnp.einsum('bqd,bkd->bqk', q.astype(jnp.bfloat16),
                       k.astype(jnp.bfloat16),
                       preferred_element_type=jnp.float32)   # (Bb, T, T)
        s = s - neg                                          # mask BEFORE scale
        logits = s * inv_scale
        e = jnp.exp(logits - jnp.max(logits, axis=-1, keepdims=True))
        # exact reciprocal on the small (Bb,T,1) denominator, broadcast mul
        p = e * (1.0 / jnp.sum(e, axis=-1, keepdims=True))
        a3 = jnp.einsum('bqk,bkd->bqd', p.astype(jnp.bfloat16),
                        v.astype(jnp.bfloat16),
                        preferred_element_type=jnp.float32)  # (Bb, T, dh)
        # head-concat via lane-aligned slot writes into the (M, D) scratch
        cat_sc[:, h * dh:(h + 1) * dh] = a3.reshape(M, dh)

    # Single lane-dense output projection (K = D, one MXU drain).
    attn = mxu(cat_sc[...].astype(jnp.bfloat16), wo_ref[0]) + bo

    # torch-module LayerNorm clone: UNBIASED std (divide by D-1), eps on std.
    def layer_norm(val, gamma, beta):
        mean = jnp.mean(val, axis=-1, keepdims=True)
        c = val - mean
        std = jnp.sqrt(jnp.sum(c * c, axis=-1, keepdims=True) * (1.0 / (D - 1)))
        inv = 1.0 / (std + eps)             # exact reciprocal (correctness)
        return gamma * (c * inv) + beta

    h1 = layer_norm(xf + attn, g1, be1)                      # (M, D)

    # --- feed-forward ------------------------------------------------------ #
    f = jnp.maximum(mxu(h1.astype(jnp.bfloat16), w1_ref[0]) + b1_ref[0], 0.0)
    f = mxu(f.astype(jnp.bfloat16), w2_ref[0]) + b2

    out = layer_norm(h1 + f, g2, be2).reshape(Bb, T, D)

    @pl.when(layer < n_layers - 1)          # skip the carry store on last layer
    def _():
        x_sc[...] = out
    o_ref[0] = out.astype(o_ref.dtype)      # per-layer output (Encoder keeps all)


# ------------------------------ wrapper ----------------------------------- #
def _pick_vmem_limit():
    """Physical VMEM minus headroom; safe fallback if the query is unavailable."""
    mib = 1024 * 1024
    try:
        cap = int(getattr(pltpu.get_tpu_info(), "vmem_capacity_bytes"))
    except Exception:
        return 48 * mib
    if cap <= 64 * mib:                      # v7x-class: leave >=12 MiB headroom
        return max(32 * mib, cap - 12 * mib)
    return cap - 24 * mib                    # v5e/v6e: use most of the 128 MiB


def encoder_stack(x0, key_mask, stacked, *, n_heads, d_model,
                  block_b=None, out_dtype=jnp.float32):
    B, T, D = x0.shape
    L = stacked["wqkv"].shape[0]
    Hd = stacked["w1"].shape[-1]
    assert D % n_heads == 0

    if block_b is None:
        # Single-TC (v5e/v6e): maximize rows per step so layer weights are only
        # DMA'd once (nb == 1) over the slower HBM.  On v7x pass block_b=B//2
        # so the "parallel" batch axis has >=2 blocks and both cores get work.
        block_b = B
    assert B % block_b == 0
    nb = B // block_b

    mask3 = key_mask.reshape(B, 1, T).astype(jnp.float32)
    kernel = functools.partial(encoder_stack_kernel, n_heads=n_heads,
                               inv_scale=1.0 / math.sqrt(d_model))

    return pl.pallas_call(
        kernel,
        out_shape=jax.ShapeDtypeStruct((L, B, T, D), out_dtype),
        grid_spec=pltpu.PrefetchScalarGridSpec(
            num_scalar_prefetch=0,
            grid=(nb, L),                    # batch blocks outer, layers inner
            in_specs=[
                pl.BlockSpec((block_b, T, D), lambda b, l: (b, 0, 0)),   # x0
                pl.BlockSpec((block_b, 1, T), lambda b, l: (b, 0, 0)),   # key mask
                pl.BlockSpec((1, D, 3 * D), lambda b, l: (l, 0, 0)),     # Wqkv (lane-dense)
                pl.BlockSpec((1, D, D), lambda b, l: (l, 0, 0)),         # Wo
                pl.BlockSpec((1, D, Hd), lambda b, l: (l, 0, 0)),        # W1
                pl.BlockSpec((1, Hd, D), lambda b, l: (l, 0, 0)),        # W2
                pl.BlockSpec((1, 1, 3 * D), lambda b, l: (l, 0, 0)),     # bqkv
                pl.BlockSpec((1, 1, Hd), lambda b, l: (l, 0, 0)),        # b1
                pl.BlockSpec((1, 6, D), lambda b, l: (l, 0, 0)),         # packed vecs
            ],
            out_specs=pl.BlockSpec((1, block_b, T, D), lambda b, l: (l, b, 0, 0)),
            scratch_shapes=[
                pltpu.VMEM((block_b, T, D), jnp.float32),      # resident activation
                pltpu.VMEM((block_b * T, D), jnp.float32),     # head-concat slab
                pltpu.VMEM((block_b, 1, T), jnp.float32),      # key-mask penalty
            ],
        ),
        compiler_params=pltpu.CompilerParams(
            dimension_semantics=("parallel", "arbitrary"),
            vmem_limit_bytes=_pick_vmem_limit(),
        ),
    )(x0, mask3, stacked["wqkv"], stacked["wo"], stacked["w1"], stacked["w2"],
      stacked["bqkv"], stacked["b1"], stacked["vec"])


def positional_encodings(T, D, dtype=jnp.float32):
    pos = jnp.arange(T, dtype=dtype)
    ch = jnp.arange(0, D, 2, dtype=dtype) / D
    inv = 1.0 / (10000.0 ** ch)
    enc = pos[:, None] * inv[None, :]                          # (T, D//2)
    return jnp.stack([jnp.sin(enc), jnp.cos(enc)], -1).reshape(T, D)


def encoder_forward(tokens, key_mask, params, *, n_heads, d_model):
    x = params["embed"][tokens]                                # (B, T, D) gather glue
    B, T, D = x.shape
    x = x + positional_encodings(T, D)[None]
    outs = encoder_stack(x, key_mask, params["stacked"],
                         n_heads=n_heads, d_model=d_model)     # (L, B, T, D)
    return [x] + [outs[l] for l in range(outs.shape[0])]       # dropout = identity (eval)


# ------------------------- parameter construction ------------------------- #
def init_linear(key, d_in, d_out):
    stdv = 1.0 / math.sqrt(d_in)
    w = jax.random.uniform(key, (d_out, d_in), jnp.float32, -stdv, stdv)
    b = jnp.zeros((1, d_out), jnp.float32)                     # torch Linear zeros bias
    return w.T, b                                              # store as (d_in, d_out)


def init_layer(key, d_model, d_hidden):
    ks = jax.random.split(key, 6)
    wq, bq = init_linear(ks[0], d_model, d_model)
    wk, bk = init_linear(ks[1], d_model, d_model)
    wv, bv = init_linear(ks[2], d_model, d_model)
    wo, bo = init_linear(ks[3], d_model, d_model)
    w1, b1 = init_linear(ks[4], d_model, d_hidden)
    w2, b2 = init_linear(ks[5], d_hidden, d_model)
    ones = jnp.ones((1, d_model), jnp.float32)
    zeros = jnp.zeros((1, d_model), jnp.float32)
    return dict(wq=wq, bq=bq, wk=wk, bk=bk, wv=wv, bv=bv, wo=wo, bo=bo,
                g1=ones, be1=zeros, w1=w1, b1=b1, w2=w2, b2=b2,
                g2=ones, be2=zeros)


def stack_layer_params(layers):
    """Stack per-layer params lane-dense for the single pallas_call (bf16 weights)."""
    wqkv = jnp.stack([jnp.concatenate([lp["wq"], lp["wk"], lp["wv"]], axis=1)
                      for lp in layers]).astype(jnp.bfloat16)    # (L, D, 3D)
    wo = jnp.stack([lp["wo"] for lp in layers]).astype(jnp.bfloat16)   # (L, D, D)
    w1 = jnp.stack([lp["w1"] for lp in layers]).astype(jnp.bfloat16)   # (L, D, Hd)
    w2 = jnp.stack([lp["w2"] for lp in layers]).astype(jnp.bfloat16)   # (L, Hd, D)
    bqkv = jnp.stack([jnp.concatenate([lp["bq"], lp["bk"], lp["bv"]], axis=1)
                      for lp in layers])                          # (L, 1, 3D) f32
    b1 = jnp.stack([lp["b1"] for lp in layers])                   # (L, 1, Hd) f32
    vec = jnp.stack([jnp.concatenate(
        [lp["bo"], lp["b2"], lp["g1"], lp["be1"], lp["g2"], lp["be2"]], axis=0)
        for lp in layers])                                        # (L, 6, D) f32
    return dict(wqkv=wqkv, wo=wo, w1=w1, w2=w2, bqkv=bqkv, b1=b1, vec=vec)


# --------------------------- pure-JAX reference ---------------------------- #
def encoder_ref(tokens, key_mask, params, *, n_heads, d_model):
    x = params["embed"][tokens]
    B, T, D = x.shape
    x = x + positional_encodings(T, D)[None]
    enc = [x]
    m = key_mask.astype(jnp.float32)[:, None, :]               # (B,1,T)
    dh = D // n_heads

    def ln(val, g, b):
        mean = val.mean(-1, keepdims=True)
        c = val - mean
        std = jnp.sqrt((c * c).sum(-1, keepdims=True) / (val.shape[-1] - 1))
        return g * c / (std + 1e-6) + b

    for lp in params["layers"]:
        q = x @ lp["wq"] + lp["bq"]
        k = x @ lp["wk"] + lp["bk"]
        v = x @ lp["wv"] + lp["bv"]
        split = lambda a: a.reshape(B, T, n_heads, dh).transpose(0, 2, 1, 3)
        qh, kh, vh = split(q), split(k), split(v)
        s = jnp.einsum('bhtd,bhsd->bhts', qh, kh)
        s = s - (1.0 - m)[:, :, None, :] * INF
        p = jax.nn.softmax(s / math.sqrt(d_model), axis=-1)
        a = jnp.einsum('bhts,bhsd->bhtd', p, vh).transpose(0, 2, 1, 3).reshape(B, T, D)
        a = a @ lp["wo"] + lp["bo"]
        h = ln(x + a, lp["g1"], lp["be1"])
        f = jnp.maximum(h @ lp["w1"] + lp["b1"], 0.0) @ lp["w2"] + lp["b2"]
        x = ln(h + f, lp["g2"], lp["be2"])
        enc.append(x)
    return enc


# --------------------------------- main ------------------------------------ #
if __name__ == "__main__":
    B, T, D, H, DHID, L, V = 2, 8, 32, 4, 64, 2, 50
    key = jax.random.PRNGKey(0)
    kemb, klay, ktok = jax.random.split(key, 3)
    layers = [init_layer(k, D, DHID) for k in jax.random.split(klay, L)]
    params = {
        "embed": jax.random.normal(kemb, (V, D), jnp.float32),  # nn.Embedding ~ N(0,1)
        "layers": layers,
        "stacked": stack_layer_params(layers),
    }
    tokens = jax.random.randint(ktok, (B, T), 0, V)
    key_mask = jnp.ones((B, T), jnp.float32)                    # all positions valid

    outs = encoder_forward(tokens, key_mask, params, n_heads=H, d_model=D)
    outs = [jax.block_until_ready(o) for o in outs]

    refs = encoder_ref(tokens, key_mask, params, n_heads=H, d_model=D)
    for o, r in zip(outs, refs):
        assert o.shape == (B, T, D)
        err = float(jnp.abs(o - r).max())
        # Exact reciprocals everywhere; the residual error is bf16 MXU operand
        # rounding vs. the all-f32 reference (~1e-2 over two layers at D=32).
        assert err < 5e-2, f"max abs error {err}"

    print("KERNEL_OK")
</pallas_src>

<mosaic_0001>
module attributes {stable_mosaic.version = 11 : i64} {
  func.func @encoder_stack_kernel(%arg0: i32, %arg1: i32, %arg2: memref<2x8x32xf32, #tpu.memory_space<vmem>>, %arg3: memref<2x1x8xf32, #tpu.memory_space<vmem>>, %arg4: memref<1x32x96xbf16, #tpu.memory_space<vmem>>, %arg5: memref<1x32x32xbf16, #tpu.memory_space<vmem>>, %arg6: memref<1x32x64xbf16, #tpu.memory_space<vmem>>, %arg7: memref<1x64x32xbf16, #tpu.memory_space<vmem>>, %arg8: memref<1x1x96xf32, #tpu.memory_space<vmem>>, %arg9: memref<1x1x64xf32, #tpu.memory_space<vmem>>, %arg10: memref<1x6x32xf32, #tpu.memory_space<vmem>>, %arg11: memref<1x2x8x32xf32, #tpu.memory_space<vmem>>, %arg12: memref<2x8x32xf32, #tpu.memory_space<vmem>>, %arg13: memref<16x32xf32, #tpu.memory_space<vmem>>, %arg14: memref<2x1x8xf32, #tpu.memory_space<vmem>>) attributes {dimension_semantics = [#tpu.dimension_semantics<parallel>, #tpu.dimension_semantics<arbitrary>], iteration_bounds = array<i64: 1, 2>, scalar_prefetch = 0 : i64, scratch_operands = 3 : i64, tpu.core_type = #tpu.core_type<tc>, window_params = [{transform_indices = @transform_0, window_bounds = array<i64: 2, 8, 32>}, {transform_indices = @transform_1, window_bounds = array<i64: 2, 1, 8>}, {transform_indices = @transform_2, window_bounds = array<i64: 1, 32, 96>}, {transform_indices = @transform_3, window_bounds = array<i64: 1, 32, 32>}, {transform_indices = @transform_4, window_bounds = array<i64: 1, 32, 64>}, {transform_indices = @transform_5, window_bounds = array<i64: 1, 64, 32>}, {transform_indices = @transform_6, window_bounds = array<i64: 1, 1, 96>}, {transform_indices = @transform_7, window_bounds = array<i64: 1, 1, 64>}, {transform_indices = @transform_8, window_bounds = array<i64: 1, 6, 32>}, {transform_indices = @transform_9, window_bounds = array<i64: 1, 2, 8, 32>}]} {
    %c0_i32 = arith.constant 0 : i32
    %0 = arith.cmpi eq, %arg1, %c0_i32 : i32
    %1 = arith.extui %0 : i1 to i32
    %c0_i32_0 = arith.constant 0 : i32
    %2 = arith.cmpi ne, %1, %c0_i32_0 : i32
    scf.if %2 {
      %c0_79 = arith.constant 0 : index
      %c0_80 = arith.constant 0 : index
      %c0_81 = arith.constant 0 : index
      %214 = vector.load %arg2[%c0_79, %c0_80, %c0_81] : memref<2x8x32xf32, #tpu.memory_space<vmem>>, vector<2x8x32xf32>
      %c0_82 = arith.constant 0 : index
      %c0_83 = arith.constant 0 : index
      %c0_84 = arith.constant 0 : index
      %215 = vector.load %arg12[%c0_82, %c0_83, %c0_84] : memref<2x8x32xf32, #tpu.memory_space<vmem>>, vector<2x8x32xf32>
      tpu.vector_store %arg12[%c0_82, %c0_83, %c0_84], %214 {strides = array<i32>} : memref<2x8x32xf32, #tpu.memory_space<vmem>>, vector<2x8x32xf32>,
      %c0_85 = arith.constant 0 : index
      %c0_86 = arith.constant 0 : index
      %c0_87 = arith.constant 0 : index
      %216 = vector.load %arg3[%c0_85, %c0_86, %c0_87] : memref<2x1x8xf32, #tpu.memory_space<vmem>>, vector<2x1x8xf32>
      %cst_88 = arith.constant 1.000000e+00 : f32
      %217 = vector.broadcast %cst_88 : f32 to vector<2x1x8xf32>
      %218 = arith.subf %217, %216 : vector<2x1x8xf32>
      %cst_89 = arith.constant 1.000000e+10 : f32
      %219 = vector.broadcast %cst_89 : f32 to vector<2x1x8xf32>
      %220 = arith.mulf %218, %219 : vector<2x1x8xf32>
      %c0_90 = arith.constant 0 : index
      %c0_91 = arith.constant 0 : index
      %c0_92 = arith.constant 0 : index
      %221 = vector.load %arg14[%c0_90, %c0_91, %c0_92] : memref<2x1x8xf32, #tpu.memory_space<vmem>>, vector<2x1x8xf32>
      tpu.vector_store %arg14[%c0_90, %c0_91, %c0_92], %220 {strides = array<i32>} : memref<2x1x8xf32, #tpu.memory_space<vmem>>, vector<2x1x8xf32>,
    } else {
    }
    %c0 = arith.constant 0 : index
    %c0_1 = arith.constant 0 : index
    %c0_2 = arith.constant 0 : index
    %3 = vector.load %arg12[%c0, %c0_1, %c0_2] : memref<2x8x32xf32, #tpu.memory_space<vmem>>, vector<2x8x32xf32>
    %4 = vector.shape_cast %3 : vector<2x8x32xf32> to vector<16x32xf32>
    %5 = arith.truncf %4 : vector<16x32xf32> to vector<16x32xbf16>
    %c0_3 = arith.constant 0 : index
    %c0_4 = arith.constant 0 : index
    %c0_5 = arith.constant 0 : index
    %6 = vector.load %arg14[%c0_3, %c0_4, %c0_5] : memref<2x1x8xf32, #tpu.memory_space<vmem>>, vector<2x1x8xf32>
    %c0_6 = arith.constant 0 : index
    %c0_7 = arith.constant 0 : index
    %c0_8 = arith.constant 0 : index
    %7 = vector.load %arg10[%c0_6, %c0_7, %c0_8] : memref<1x6x32xf32, #tpu.memory_space<vmem>>, vector<1x6x32xf32>
    %8 = vector.shape_cast %7 : vector<1x6x32xf32> to vector<6x32xf32>
    %9 = vector.extract_strided_slice %8 {offsets = [0, 0], sizes = [1, 32], strides = [1, 1]} : vector<6x32xf32> to vector<1x32xf32>
    %10 = vector.extract_strided_slice %8 {offsets = [1, 0], sizes = [1, 32], strides = [1, 1]} : vector<6x32xf32> to vector<1x32xf32>
    %11 = vector.extract_strided_slice %8 {offsets = [2, 0], sizes = [1, 32], strides = [1, 1]} : vector<6x32xf32> to vector<1x32xf32>
    %12 = vector.extract_strided_slice %8 {offsets = [3, 0], sizes = [1, 32], strides = [1, 1]} : vector<6x32xf32> to vector<1x32xf32>
    %13 = vector.extract_strided_slice %8 {offsets = [4, 0], sizes = [1, 32], strides = [1, 1]} : vector<6x32xf32> to vector<1x32xf32>
    %14 = vector.extract_strided_slice %8 {offsets = [5, 0], sizes = [1, 32], strides = [1, 1]} : vector<6x32xf32> to vector<1x32xf32>
    %c0_9 = arith.constant 0 : index
    %c0_10 = arith.constant 0 : index
    %c0_11 = arith.constant 0 : index
    %15 = vector.load %arg4[%c0_9, %c0_10, %c0_11] : memref<1x32x96xbf16, #tpu.memory_space<vmem>>, vector<1x32x96xbf16>
    %16 = vector.shape_cast %15 : vector<1x32x96xbf16> to vector<32x96xbf16>
    %cst = arith.constant dense<0.000000e+00> : vector<16x96xf32>
    %17 = tpu.matmul %5, %16, %cst {dimension_numbers = #tpu.dot_dimension_numbers<[1], [0], [0], [1], [0, 0, 1, 1], [], []>} : vector<16x32xbf16>, vector<32x96xbf16>, vector<16x96xf32> -> vector<16x96xf32>
    %c0_12 = arith.constant 0 : index
    %c0_13 = arith.constant 0 : index
    %c0_14 = arith.constant 0 : index
    %18 = vector.load %arg8[%c0_12, %c0_13, %c0_14] : memref<1x1x96xf32, #tpu.memory_space<vmem>>, vector<1x1x96xf32>
    %19 = vector.shape_cast %18 : vector<1x1x96xf32> to vector<1x96xf32>
    %20 = vector.broadcast %19 : vector<1x96xf32> to vector<16x96xf32>
    %21 = arith.addf %17, %20 : vector<16x96xf32>
    %22 = vector.extract_strided_slice %21 {offsets = [0, 0], sizes = [16, 8], strides = [1, 1]} : vector<16x96xf32> to vector<16x8xf32>
    %23 = vector.shape_cast %22 : vector<16x8xf32> to vector<2x8x8xf32>
    %24 = vector.extract_strided_slice %21 {offsets = [0, 32], sizes = [16, 8], strides = [1, 1]} : vector<16x96xf32> to vector<16x8xf32>
    %25 = vector.shape_cast %24 : vector<16x8xf32> to vector<2x8x8xf32>
    %26 = vector.extract_strided_slice %21 {offsets = [0, 64], sizes = [16, 8], strides = [1, 1]} : vector<16x96xf32> to vector<16x8xf32>
    %27 = vector.shape_cast %26 : vector<16x8xf32> to vector<2x8x8xf32>
    %28 = arith.truncf %23 : vector<2x8x8xf32> to vector<2x8x8xbf16>
    %29 = arith.truncf %25 : vector<2x8x8xf32> to vector<2x8x8xbf16>
    "tpu.trace_start"() <{level = 10 : i32, message = "bqd,bkd->bqk"}> : () -> ()
    %cst_15 = arith.constant dense<0.000000e+00> : vector<2x8x8xf32>
    %30 = tpu.matmul %28, %29, %cst_15 {dimension_numbers = #tpu.dot_dimension_numbers<[2], [2], [1], [1], [0, 0, 0, 1, 1, 1], [0], [0]>} : vector<2x8x8xbf16>, vector<2x8x8xbf16>, vector<2x8x8xf32> -> vector<2x8x8xf32>
    "tpu.trace_stop"() : () -> ()
    %31 = vector.broadcast %6 : vector<2x1x8xf32> to vector<2x8x8xf32>
    %32 = arith.subf %30, %31 : vector<2x8x8xf32>
    %cst_16 = arith.constant 0.176776692 : f32
    %33 = vector.broadcast %cst_16 : f32 to vector<2x8x8xf32>
    %34 = arith.mulf %32, %33 : vector<2x8x8xf32>
    %cst_17 = arith.constant dense<0xFF800000> : vector<2x8xf32>
    %35 = vector.multi_reduction <maximumf>, %34, %cst_17 [2] : vector<2x8x8xf32> to vector<2x8xf32>
    %36 = vector.shape_cast %35 : vector<2x8xf32> to vector<2x8x1xf32>
    %37 = vector.broadcast %36 : vector<2x8x1xf32> to vector<2x8x8xf32>
    %38 = arith.subf %34, %37 : vector<2x8x8xf32>
    %39 = math.exp %38 : vector<2x8x8xf32>
    %cst_18 = arith.constant dense<0.000000e+00> : vector<2x8xf32>
    %40 = vector.multi_reduction <add>, %39, %cst_18 [2] : vector<2x8x8xf32> to vector<2x8xf32>
    %41 = vector.shape_cast %40 : vector<2x8xf32> to vector<2x8x1xf32>
    %cst_19 = arith.constant 1.000000e+00 : f32
    %42 = vector.broadcast %cst_19 : f32 to vector<2x8x1xf32>
    %43 = arith.divf %42, %41 : vector<2x8x1xf32>
    %44 = vector.broadcast %43 : vector<2x8x1xf32> to vector<2x8x8xf32>
    %45 = arith.mulf %39, %44 : vector<2x8x8xf32>
    %46 = arith.truncf %45 : vector<2x8x8xf32> to vector<2x8x8xbf16>
    %47 = arith.truncf %27 : vector<2x8x8xf32> to vector<2x8x8xbf16>
    "tpu.trace_start"() <{level = 10 : i32, message = "bqk,bkd->bqd"}> : () -> ()
    %cst_20 = arith.constant dense<0.000000e+00> : vector<2x8x8xf32>
    %48 = tpu.matmul %46, %47, %cst_20 {dimension_numbers = #tpu.dot_dimension_numbers<[2], [1], [1], [2], [0, 0, 0, 1, 1, 2], [0], [0]>} : vector<2x8x8xbf16>, vector<2x8x8xbf16>, vector<2x8x8xf32> -> vector<2x8x8xf32>
    "tpu.trace_stop"() : () -> ()
    %49 = vector.shape_cast %48 : vector<2x8x8xf32> to vector<16x8xf32>
    %c0_21 = arith.constant 0 : index
    %c0_22 = arith.constant 0 : index
    %50 = vector.load %arg13[%c0_21, %c0_22] : memref<16x32xf32, #tpu.memory_space<vmem>>, vector<16x8xf32>
    tpu.vector_store %arg13[%c0_21, %c0_22], %49 {strides = array<i32>} : memref<16x32xf32, #tpu.memory_space<vmem>>, vector<16x8xf32>,
    %51 = vector.extract_strided_slice %21 {offsets = [0, 8], sizes = [16, 8], strides = [1, 1]} : vector<16x96xf32> to vector<16x8xf32>
    %52 = vector.shape_cast %51 : vector<16x8xf32> to vector<2x8x8xf32>
    %53 = vector.extract_strided_slice %21 {offsets = [0, 40], sizes = [16, 8], strides = [1, 1]} : vector<16x96xf32> to vector<16x8xf32>
    %54 = vector.shape_cast %53 : vector<16x8xf32> to vector<2x8x8xf32>
    %55 = vector.extract_strided_slice %21 {offsets = [0, 72], sizes = [16, 8], strides = [1, 1]} : vector<16x96xf32> to vector<16x8xf32>
    %56 = vector.shape_cast %55 : vector<16x8xf32> to vector<2x8x8xf32>
    %57 = arith.truncf %52 : vector<2x8x8xf32> to vector<2x8x8xbf16>
    %58 = arith.truncf %54 : vector<2x8x8xf32> to vector<2x8x8xbf16>
    "tpu.trace_start"() <{level = 10 : i32, message = "bqd,bkd->bqk"}> : () -> ()
    %cst_23 = arith.constant dense<0.000000e+00> : vector<2x8x8xf32>
    %59 = tpu.matmul %57, %58, %cst_23 {dimension_numbers = #tpu.dot_dimension_numbers<[2], [2], [1], [1], [0, 0, 0, 1, 1, 1], [0], [0]>} : vector<2x8x8xbf16>, vector<2x8x8xbf16>, vector<2x8x8xf32> -> vector<2x8x8xf32>
    "tpu.trace_stop"() : () -> ()
    %60 = vector.broadcast %6 : vector<2x1x8xf32> to vector<2x8x8xf32>
    %61 = arith.subf %59, %60 : vector<2x8x8xf32>
    %cst_24 = arith.constant 0.176776692 : f32
    %62 = vector.broadcast %cst_24 : f32 to vector<2x8x8xf32>
    %63 = arith.mulf %61, %62 : vector<2x8x8xf32>
    %cst_25 = arith.constant dense<0xFF800000> : vector<2x8xf32>
    %64 = vector.multi_reduction <maximumf>, %63, %cst_25 [2] : vector<2x8x8xf32> to vector<2x8xf32>
    %65 = vector.shape_cast %64 : vector<2x8xf32> to vector<2x8x1xf32>
    %66 = vector.broadcast %65 : vector<2x8x1xf32> to vector<2x8x8xf32>
    %67 = arith.subf %63, %66 : vector<2x8x8xf32>
    %68 = math.exp %67 : vector<2x8x8xf32>
    %cst_26 = arith.constant dense<0.000000e+00> : vector<2x8xf32>
    %69 = vector.multi_reduction <add>, %68, %cst_26 [2] : vector<2x8x8xf32> to vector<2x8xf32>
    %70 = vector.shape_cast %69 : vector<2x8xf32> to vector<2x8x1xf32>
    %cst_27 = arith.constant 1.000000e+00 : f32
    %71 = vector.broadcast %cst_27 : f32 to vector<2x8x1xf32>
    %72 = arith.divf %71, %70 : vector<2x8x1xf32>
    %73 = vector.broadcast %72 : vector<2x8x1xf32> to vector<2x8x8xf32>
    %74 = arith.mulf %68, %73 : vector<2x8x8xf32>
    %75 = arith.truncf %74 : vector<2x8x8xf32> to vector<2x8x8xbf16>
    %76 = arith.truncf %56 : vector<2x8x8xf32> to vector<2x8x8xbf16>
    "tpu.trace_start"() <{level = 10 : i32, message = "bqk,bkd->bqd"}> : () -> ()
    %cst_28 = arith.constant dense<0.000000e+00> : vector<2x8x8xf32>
    %77 = tpu.matmul %75, %76, %cst_28 {dimension_numbers = #tpu.dot_dimension_numbers<[2], [1], [1], [2], [0, 0, 0, 1, 1, 2], [0], [0]>} : vector<2x8x8xbf16>, vector<2x8x8xbf16>, vector<2x8x8xf32> -> vector<2x8x8xf32>
    "tpu.trace_stop"() : () -> ()
    %78 = vector.shape_cast %77 : vector<2x8x8xf32> to vector<16x8xf32>
    %c0_29 = arith.constant 0 : index
    %c8 = arith.constant 8 : index
    %79 = vector.load %arg13[%c0_29, %c8] : memref<16x32xf32, #tpu.memory_space<vmem>>, vector<16x8xf32>
    tpu.vector_store %arg13[%c0_29, %c8], %78 {strides = array<i32>} : memref<16x32xf32, #tpu.memory_space<vmem>>, vector<16x8xf32>,
    %80 = vector.extract_strided_slice %21 {offsets = [0, 16], sizes = [16, 8], strides = [1, 1]} : vector<16x96xf32> to vector<16x8xf32>
    %81 = vector.shape_cast %80 : vector<16x8xf32> to vector<2x8x8xf32>
    %82 = vector.extract_strided_slice %21 {offsets = [0, 48], sizes = [16, 8], strides = [1, 1]} : vector<16x96xf32> to vector<16x8xf32>
    %83 = vector.shape_cast %82 : vector<16x8xf32> to vector<2x8x8xf32>
    %84 = vector.extract_strided_slice %21 {offsets = [0, 80], sizes = [16, 8], strides = [1, 1]} : vector<16x96xf32> to vector<16x8xf32>
    %85 = vector.shape_cast %84 : vector<16x8xf32> to vector<2x8x8xf32>
    %86 = arith.truncf %81 : vector<2x8x8xf32> to vector<2x8x8xbf16>
    %87 = arith.truncf %83 : vector<2x8x8xf32> to vector<2x8x8xbf16>
    "tpu.trace_start"() <{level = 10 : i32, message = "bqd,bkd->bqk"}> : () -> ()
    %cst_30 = arith.constant dense<0.000000e+00> : vector<2x8x8xf32>
    %88 = tpu.matmul %86, %87, %cst_30 {dimension_numbers = #tpu.dot_dimension_numbers<[2], [2], [1], [1], [0, 0, 0, 1, 1, 1], [0], [0]>} : vector<2x8x8xbf16>, vector<2x8x8xbf16>, vector<2x8x8xf32> -> vector<2x8x8xf32>
    "tpu.trace_stop"() : () -> ()
    %89 = vector.broadcast %6 : vector<2x1x8xf32> to vector<2x8x8xf32>
    %90 = arith.subf %88, %89 : vector<2x8x8xf32>
    %cst_31 = arith.constant 0.176776692 : f32
    %91 = vector.broadcast %cst_31 : f32 to vector<2x8x8xf32>
    %92 = arith.mulf %90, %91 : vector<2x8x8xf32>
    %cst_32 = arith.constant dense<0xFF800000> : vector<2x8xf32>
    %93 = vector.multi_reduction <maximumf>, %92, %cst_32 [2] : vector<2x8x8xf32> to vector<2x8xf32>
    %94 = vector.shape_cast %93 : vector<2x8xf32> to vector<2x8x1xf32>
    %95 = vector.broadcast %94 : vector<2x8x1xf32> to vector<2x8x8xf32>
    %96 = arith.subf %92, %95 : vector<2x8x8xf32>
    %97 = math.exp %96 : vector<2x8x8xf32>
    %cst_33 = arith.constant dense<0.000000e+00> : vector<2x8xf32>
    %98 = vector.multi_reduction <add>, %97, %cst_33 [2] : vector<2x8x8xf32> to vector<2x8xf32>
    %99 = vector.shape_cast %98 : vector<2x8xf32> to vector<2x8x1xf32>
    %cst_34 = arith.constant 1.000000e+00 : f32
    %100 = vector.broadcast %cst_34 : f32 to vector<2x8x1xf32>
    %101 = arith.divf %100, %99 : vector<2x8x1xf32>
    %102 = vector.broadcast %101 : vector<2x8x1xf32> to vector<2x8x8xf32>
    %103 = arith.mulf %97, %102 : vector<2x8x8xf32>
    %104 = arith.truncf %103 : vector<2x8x8xf32> to vector<2x8x8xbf16>
    %105 = arith.truncf %85 : vector<2x8x8xf32> to vector<2x8x8xbf16>
    "tpu.trace_start"() <{level = 10 : i32, message = "bqk,bkd->bqd"}> : () -> ()
    %cst_35 = arith.constant dense<0.000000e+00> : vector<2x8x8xf32>
    %106 = tpu.matmul %104, %105, %cst_35 {dimension_numbers = #tpu.dot_dimension_numbers<[2], [1], [1], [2], [0, 0, 0, 1, 1, 2], [0], [0]>} : vector<2x8x8xbf16>, vector<2x8x8xbf16>, vector<2x8x8xf32> -> vector<2x8x8xf32>
    "tpu.trace_stop"() : () -> ()
    %107 = vector.shape_cast %106 : vector<2x8x8xf32> to vector<16x8xf32>
    %c0_36 = arith.constant 0 : index
    %c16 = arith.constant 16 : index
    %108 = vector.load %arg13[%c0_36, %c16] : memref<16x32xf32, #tpu.memory_space<vmem>>, vector<16x8xf32>
    tpu.vector_store %arg13[%c0_36, %c16], %107 {strides = array<i32>} : memref<16x32xf32, #tpu.memory_space<vmem>>, vector<16x8xf32>,
    %109 = vector.extract_strided_slice %21 {offsets = [0, 24], sizes = [16, 8], strides = [1, 1]} : vector<16x96xf32> to vector<16x8xf32>
    %110 = vector.shape_cast %109 : vector<16x8xf32> to vector<2x8x8xf32>
    %111 = vector.extract_strided_slice %21 {offsets = [0, 56], sizes = [16, 8], strides = [1, 1]} : vector<16x96xf32> to vector<16x8xf32>
    %112 = vector.shape_cast %111 : vector<16x8xf32> to vector<2x8x8xf32>
    %113 = vector.extract_strided_slice %21 {offsets = [0, 88], sizes = [16, 8], strides = [1, 1]} : vector<16x96xf32> to vector<16x8xf32>
    %114 = vector.shape_cast %113 : vector<16x8xf32> to vector<2x8x8xf32>
    %115 = arith.truncf %110 : vector<2x8x8xf32> to vector<2x8x8xbf16>
    %116 = arith.truncf %112 : vector<2x8x8xf32> to vector<2x8x8xbf16>
    "tpu.trace_start"() <{level = 10 : i32, message = "bqd,bkd->bqk"}> : () -> ()
    %cst_37 = arith.constant dense<0.000000e+00> : vector<2x8x8xf32>
    %117 = tpu.matmul %115, %116, %cst_37 {dimension_numbers = #tpu.dot_dimension_numbers<[2], [2], [1], [1], [0, 0, 0, 1, 1, 1], [0], [0]>} : vector<2x8x8xbf16>, vector<2x8x8xbf16>, vector<2x8x8xf32> -> vector<2x8x8xf32>
    "tpu.trace_stop"() : () -> ()
    %118 = vector.broadcast %6 : vector<2x1x8xf32> to vector<2x8x8xf32>
    %119 = arith.subf %117, %118 : vector<2x8x8xf32>
    %cst_38 = arith.constant 0.176776692 : f32
    %120 = vector.broadcast %cst_38 : f32 to vector<2x8x8xf32>
    %121 = arith.mulf %119, %120 : vector<2x8x8xf32>
    %cst_39 = arith.constant dense<0xFF800000> : vector<2x8xf32>
    %122 = vector.multi_reduction <maximumf>, %121, %cst_39 [2] : vector<2x8x8xf32> to vector<2x8xf32>
    %123 = vector.shape_cast %122 : vector<2x8xf32> to vector<2x8x1xf32>
    %124 = vector.broadcast %123 : vector<2x8x1xf32> to vector<2x8x8xf32>
    %125 = arith.subf %121, %124 : vector<2x8x8xf32>
    %126 = math.exp %125 : vector<2x8x8xf32>
    %cst_40 = arith.constant dense<0.000000e+00> : vector<2x8xf32>
    %127 = vector.multi_reduction <add>, %126, %cst_40 [2] : vector<2x8x8xf32> to vector<2x8xf32>
    %128 = vector.shape_cast %127 : vector<2x8xf32> to vector<2x8x1xf32>
    %cst_41 = arith.constant 1.000000e+00 : f32
    %129 = vector.broadcast %cst_41 : f32 to vector<2x8x1xf32>
    %130 = arith.divf %129, %128 : vector<2x8x1xf32>
    %131 = vector.broadcast %130 : vector<2x8x1xf32> to vector<2x8x8xf32>
    %132 = arith.mulf %126, %131 : vector<2x8x8xf32>
    %133 = arith.truncf %132 : vector<2x8x8xf32> to vector<2x8x8xbf16>
    %134 = arith.truncf %114 : vector<2x8x8xf32> to vector<2x8x8xbf16>
    "tpu.trace_start"() <{level = 10 : i32, message = "bqk,bkd->bqd"}> : () -> ()
    %cst_42 = arith.constant dense<0.000000e+00> : vector<2x8x8xf32>
    %135 = tpu.matmul %133, %134, %cst_42 {dimension_numbers = #tpu.dot_dimension_numbers<[2], [1], [1], [2], [0, 0, 0, 1, 1, 2], [0], [0]>} : vector<2x8x8xbf16>, vector<2x8x8xbf16>, vector<2x8x8xf32> -> vector<2x8x8xf32>
    "tpu.trace_stop"() : () -> ()
    %136 = vector.shape_cast %135 : vector<2x8x8xf32> to vector<16x8xf32>
    %c0_43 = arith.constant 0 : index
    %c24 = arith.constant 24 : index
    %137 = vector.load %arg13[%c0_43, %c24] : memref<16x32xf32, #tpu.memory_space<vmem>>, vector<16x8xf32>
    tpu.vector_store %arg13[%c0_43, %c24], %136 {strides = array<i32>} : memref<16x32xf32, #tpu.memory_space<vmem>>, vector<16x8xf32>,
    %c0_44 = arith.constant 0 : index
    %c0_45 = arith.constant 0 : index
    %138 = vector.load %arg13[%c0_44, %c0_45] : memref<16x32xf32, #tpu.memory_space<vmem>>, vector<16x32xf32>
    %139 = arith.truncf %138 : vector<16x32xf32> to vector<16x32xbf16>
    %c0_46 = arith.constant 0 : index
    %c0_47 = arith.constant 0 : index
    %c0_48 = arith.constant 0 : index
    %140 = vector.load %arg5[%c0_46, %c0_47, %c0_48] : memref<1x32x32xbf16, #tpu.memory_space<vmem>>, vector<1x32x32xbf16>
    %141 = vector.shape_cast %140 : vector<1x32x32xbf16> to vector<32x32xbf16>
    %cst_49 = arith.constant dense<0.000000e+00> : vector<16x32xf32>
    %142 = tpu.matmul %139, %141, %cst_49 {dimension_numbers = #tpu.dot_dimension_numbers<[1], [0], [0], [1], [0, 0, 1, 1], [], []>} : vector<16x32xbf16>, vector<32x32xbf16>, vector<16x32xf32> -> vector<16x32xf32>
    %143 = vector.broadcast %9 : vector<1x32xf32> to vector<16x32xf32>
    %144 = arith.addf %142, %143 : vector<16x32xf32>
    %145 = arith.addf %4, %144 : vector<16x32xf32>
    %cst_50 = arith.constant dense<0.000000e+00> : vector<16xf32>
    %146 = vector.multi_reduction <add>, %145, %cst_50 [1] : vector<16x32xf32> to vector<16xf32>
    %147 = vector.shape_cast %146 : vector<16xf32> to vector<16x1xf32>
    %cst_51 = arith.constant 3.200000e+01 : f32
    %148 = vector.broadcast %cst_51 : f32 to vector<16x1xf32>
    %149 = arith.divf %147, %148 : vector<16x1xf32>
    %150 = vector.broadcast %149 : vector<16x1xf32> to vector<16x32xf32>
    %151 = arith.subf %145, %150 : vector<16x32xf32>
    %152 = arith.mulf %151, %151 : vector<16x32xf32>
    %cst_52 = arith.constant dense<0.000000e+00> : vector<16xf32>
    %153 = vector.multi_reduction <add>, %152, %cst_52 [1] : vector<16x32xf32> to vector<16xf32>
    %154 = vector.shape_cast %153 : vector<16xf32> to vector<16x1xf32>
    %cst_53 = arith.constant 0.0322580636 : f32
    %155 = vector.broadcast %cst_53 : f32 to vector<16x1xf32>
    %156 = arith.mulf %154, %155 : vector<16x1xf32>
    %157 = math.sqrt %156 : vector<16x1xf32>
    %cst_54 = arith.constant 9.99999997E-7 : f32
    %158 = vector.broadcast %cst_54 : f32 to vector<16x1xf32>
    %159 = arith.addf %157, %158 : vector<16x1xf32>
    %cst_55 = arith.constant 1.000000e+00 : f32
    %160 = vector.broadcast %cst_55 : f32 to vector<16x1xf32>
    %161 = arith.divf %160, %159 : vector<16x1xf32>
    %162 = vector.broadcast %161 : vector<16x1xf32> to vector<16x32xf32>
    %163 = arith.mulf %151, %162 : vector<16x32xf32>
    %164 = vector.broadcast %11 : vector<1x32xf32> to vector<16x32xf32>
    %165 = arith.mulf %164, %163 : vector<16x32xf32>
    %166 = vector.broadcast %12 : vector<1x32xf32> to vector<16x32xf32>
    %167 = arith.addf %165, %166 : vector<16x32xf32>
    %168 = arith.truncf %167 : vector<16x32xf32> to vector<16x32xbf16>
    %c0_56 = arith.constant 0 : index
    %c0_57 = arith.constant 0 : index
    %c0_58 = arith.constant 0 : index
    %169 = vector.load %arg6[%c0_56, %c0_57, %c0_58] : memref<1x32x64xbf16, #tpu.memory_space<vmem>>, vector<1x32x64xbf16>
    %170 = vector.shape_cast %169 : vector<1x32x64xbf16> to vector<32x64xbf16>
    %cst_59 = arith.constant dense<0.000000e+00> : vector<16x64xf32>
    %171 = tpu.matmul %168, %170, %cst_59 {dimension_numbers = #tpu.dot_dimension_numbers<[1], [0], [0], [1], [0, 0, 1, 1], [], []>} : vector<16x32xbf16>, vector<32x64xbf16>, vector<16x64xf32> -> vector<16x64xf32>
    %c0_60 = arith.constant 0 : index
    %c0_61 = arith.constant 0 : index
    %c0_62 = arith.constant 0 : index
    %172 = vector.load %arg9[%c0_60, %c0_61, %c0_62] : memref<1x1x64xf32, #tpu.memory_space<vmem>>, vector<1x1x64xf32>
    %173 = vector.shape_cast %172 : vector<1x1x64xf32> to vector<1x64xf32>
    %174 = vector.broadcast %173 : vector<1x64xf32> to vector<16x64xf32>
    %175 = arith.addf %171, %174 : vector<16x64xf32>
    %cst_63 = arith.constant 0.000000e+00 : f32
    %176 = vector.broadcast %cst_63 : f32 to vector<16x64xf32>
    %177 = arith.maximumf %175, %176 : vector<16x64xf32>
    %178 = arith.truncf %177 : vector<16x64xf32> to vector<16x64xbf16>
    %c0_64 = arith.constant 0 : index
    %c0_65 = arith.constant 0 : index
    %c0_66 = arith.constant 0 : index
    %179 = vector.load %arg7[%c0_64, %c0_65, %c0_66] : memref<1x64x32xbf16, #tpu.memory_space<vmem>>, vector<1x64x32xbf16>
    %180 = vector.shape_cast %179 : vector<1x64x32xbf16> to vector<64x32xbf16>
    %cst_67 = arith.constant dense<0.000000e+00> : vector<16x32xf32>
    %181 = tpu.matmul %178, %180, %cst_67 {dimension_numbers = #tpu.dot_dimension_numbers<[1], [0], [0], [1], [0, 0, 1, 1], [], []>} : vector<16x64xbf16>, vector<64x32xbf16>, vector<16x32xf32> -> vector<16x32xf32>
    %182 = vector.broadcast %10 : vector<1x32xf32> to vector<16x32xf32>
    %183 = arith.addf %181, %182 : vector<16x32xf32>
    %184 = arith.addf %167, %183 : vector<16x32xf32>
    %cst_68 = arith.constant dense<0.000000e+00> : vector<16xf32>
    %185 = vector.multi_reduction <add>, %184, %cst_68 [1] : vector<16x32xf32> to vector<16xf32>
    %186 = vector.shape_cast %185 : vector<16xf32> to vector<16x1xf32>
    %cst_69 = arith.constant 3.200000e+01 : f32
    %187 = vector.broadcast %cst_69 : f32 to vector<16x1xf32>
    %188 = arith.divf %186, %187 : vector<16x1xf32>
    %189 = vector.broadcast %188 : vector<16x1xf32> to vector<16x32xf32>
    %190 = arith.subf %184, %189 : vector<16x32xf32>
    %191 = arith.mulf %190, %190 : vector<16x32xf32>
    %cst_70 = arith.constant dense<0.000000e+00> : vector<16xf32>
    %192 = vector.multi_reduction <add>, %191, %cst_70 [1] : vector<16x32xf32> to vector<16xf32>
    %193 = vector.shape_cast %192 : vector<16xf32> to vector<16x1xf32>
    %cst_71 = arith.constant 0.0322580636 : f32
    %194 = vector.broadcast %cst_71 : f32 to vector<16x1xf32>
    %195 = arith.mulf %193, %194 : vector<16x1xf32>
    %196 = math.sqrt %195 : vector<16x1xf32>
    %cst_72 = arith.constant 9.99999997E-7 : f32
    %197 = vector.broadcast %cst_72 : f32 to vector<16x1xf32>
    %198 = arith.addf %196, %197 : vector<16x1xf32>
    %cst_73 = arith.constant 1.000000e+00 : f32
    %199 = vector.broadcast %cst_73 : f32 to vector<16x1xf32>
    %200 = arith.divf %199, %198 : vector<16x1xf32>
    %201 = vector.broadcast %200 : vector<16x1xf32> to vector<16x32xf32>
    %202 = arith.mulf %190, %201 : vector<16x32xf32>
    %203 = vector.broadcast %13 : vector<1x32xf32> to vector<16x32xf32>
    %204 = arith.mulf %203, %202 : vector<16x32xf32>
    %205 = vector.broadcast %14 : vector<1x32xf32> to vector<16x32xf32>
    %206 = arith.addf %204, %205 : vector<16x32xf32>
    %207 = vector.shape_cast %206 : vector<16x32xf32> to vector<2x8x32xf32>
    %c1_i32 = arith.constant 1 : i32
    %208 = arith.cmpi slt, %arg1, %c1_i32 : i32
    %209 = arith.extui %208 : i1 to i32
    %c0_i32_74 = arith.constant 0 : i32
    %210 = arith.cmpi ne, %209, %c0_i32_74 : i32
    scf.if %210 {
      %c0_79 = arith.constant 0 : index
      %c0_80 = arith.constant 0 : index
      %c0_81 = arith.constant 0 : index
      %214 = vector.load %arg12[%c0_79, %c0_80, %c0_81] : memref<2x8x32xf32, #tpu.memory_space<vmem>>, vector<2x8x32xf32>
      tpu.vector_store %arg12[%c0_79, %c0_80, %c0_81], %207 {strides = array<i32>} : memref<2x8x32xf32, #tpu.memory_space<vmem>>, vector<2x8x32xf32>,
    } else {
    }
    %c0_75 = arith.constant 0 : index
    %c0_76 = arith.constant 0 : index
    %c0_77 = arith.constant 0 : index
    %c0_78 = arith.constant 0 : index
    %211 = vector.load %arg11[%c0_75, %c0_76, %c0_77, %c0_78] : memref<1x2x8x32xf32, #tpu.memory_space<vmem>>, vector<1x2x8x32xf32>
    %212 = vector.shape_cast %211 : vector<1x2x8x32xf32> to vector<2x8x32xf32>
    %213 = vector.shape_cast %207 : vector<2x8x32xf32> to vector<1x2x8x32xf32>
    tpu.vector_store %arg11[%c0_75, %c0_76, %c0_77, %c0_78], %213 {strides = array<i32>} : memref<1x2x8x32xf32, #tpu.memory_space<vmem>>, vector<1x2x8x32xf32>,
    return
  }
  func.func @transform_0(%arg0: i32, %arg1: i32) -> (i32, i32, i32) {
    %c0_i32 = arith.constant 0 : i32
    %c0_i32_0 = arith.constant 0 : i32
    %c0_i32_1 = arith.constant 0 : i32
    return %arg0, %c0_i32, %c0_i32_0 : i32, i32, i32
  }
  func.func @transform_1(%arg0: i32, %arg1: i32) -> (i32, i32, i32) {
    %c0_i32 = arith.constant 0 : i32
    %c0_i32_0 = arith.constant 0 : i32
    %c0_i32_1 = arith.constant 0 : i32
    return %arg0, %c0_i32, %c0_i32_0 : i32, i32, i32
  }
  func.func @transform_2(%arg0: i32, %arg1: i32) -> (i32, i32, i32) {
    %c0_i32 = arith.constant 0 : i32
    %c0_i32_0 = arith.constant 0 : i32
    %c0_i32_1 = arith.constant 0 : i32
    return %arg1, %c0_i32, %c0_i32_0 : i32, i32, i32
  }
  func.func @transform_3(%arg0: i32, %arg1: i32) -> (i32, i32, i32) {
    %c0_i32 = arith.constant 0 : i32
    %c0_i32_0 = arith.constant 0 : i32
    %c0_i32_1 = arith.constant 0 : i32
    return %arg1, %c0_i32, %c0_i32_0 : i32, i32, i32
  }
  func.func @transform_4(%arg0: i32, %arg1: i32) -> (i32, i32, i32) {
    %c0_i32 = arith.constant 0 : i32
    %c0_i32_0 = arith.constant 0 : i32
    %c0_i32_1 = arith.constant 0 : i32
    return %arg1, %c0_i32, %c0_i32_0 : i32, i32, i32
  }
  func.func @transform_5(%arg0: i32, %arg1: i32) -> (i32, i32, i32) {
    %c0_i32 = arith.constant 0 : i32
    %c0_i32_0 = arith.constant 0 : i32
    %c0_i32_1 = arith.constant 0 : i32
    return %arg1, %c0_i32, %c0_i32_0 : i32, i32, i32
  }
  func.func @transform_6(%arg0: i32, %arg1: i32) -> (i32, i32, i32) {
    %c0_i32 = arith.constant 0 : i32
    %c0_i32_0 = arith.constant 0 : i32
    %c0_i32_1 = arith.constant 0 : i32
    return %arg1, %c0_i32, %c0_i32_0 : i32, i32, i32
  }
  func.func @transform_7(%arg0: i32, %arg1: i32) -> (i32, i32, i32) {
    %c0_i32 = arith.constant 0 : i32
    %c0_i32_0 = arith.constant 0 : i32
    %c0_i32_1 = arith.constant 0 : i32
    return %arg1, %c0_i32, %c0_i32_0 : i32, i32, i32
  }
  func.func @transform_8(%arg0: i32, %arg1: i32) -> (i32, i32, i32) {
    %c0_i32 = arith.constant 0 : i32
    %c0_i32_0 = arith.constant 0 : i32
    %c0_i32_1 = arith.constant 0 : i32
    return %arg1, %c0_i32, %c0_i32_0 : i32, i32, i32
  }
  func.func @transform_9(%arg0: i32, %arg1: i32) -> (i32, i32, i32, i32) {
    %c0_i32 = arith.constant 0 : i32
    %c0_i32_0 = arith.constant 0 : i32
    %c0_i32_1 = arith.constant 0 : i32
    return %arg1, %arg0, %c0_i32, %c0_i32_0 : i32, i32, i32, i32
  }
}

</mosaic_0001>

<bundles_post_ra>
// kernel: tpu_custom_call.1
= control target key start
LH: loop header
LB: loop body
LE: loop exit
PB: predicated region body
PF: predicated region fallthrough
CT: control target
= control target key end

     0   :  { %s3063_s0 = inlined_call_operand.hbm [shape: f32[2,8,32], index: 0, kind: input, shape index: {}]   ;;  %s3064_s1 = inlined_call_operand.vmem [shape: f32[2,1,8], index: 1, kind: input, shape index: {}]   ;;  %s3065_s2 = inlined_call_operand.vmem [shape: bf16[2,32,96], index: 2, kind: input, shape index: {}]   ;;  %s3066_s3 = inlined_call_operand.vmem [shape: bf16[2,32,32], index: 3, kind: input, shape index: {}]   ;;  %s3067_s4 = inlined_call_operand.vmem [shape: bf16[2,32,64], index: 4, kind: input, shape index: {}]   ;;  %s3068_s5 = inlined_call_operand.vmem [shape: bf16[2,64,32], index: 5, kind: input, shape index: {}]   ;;  %s3069_s6 = inlined_call_operand.vmem [shape: f32[2,1,96], index: 6, kind: input, shape index: {}]   ;;  %s3070_s7 = inlined_call_operand.vmem [shape: f32[2,1,64], index: 7, kind: input, shape index: {}]   ;;  %s3071_s8 = inlined_call_operand.vmem [shape: f32[2,6,32], index: 8, kind: input, shape index: {}]   ;;  %s3072_s9 = inlined_call_operand.hbm [shape: f32[2,2,8,32], index: 9, kind: output, shape index: {}]  }
   0x1   :  { %3085 = sst [smem:[#allocation18_spill]] %s3063_s0 }
   0x2   :  { %3086 = sst [smem:[#allocation19_spill]] %s3065_s2 }
   0x3   :  { %3087 = sst [smem:[#allocation20_spill]] %s3066_s3 }
   0x4   :  { %14 = vsyncpa [#allocation6], 0 }
   0x5   :  { %15 = vsyncpa [#allocation7], 0 }
   0x6   :  { %17 = vsyncpa [#allocation7 + $0x1], 0  ;;  %s2629_s30 = smov 0   ;;  %s2631_s10 = smov 0  }
   0x7   :  { %s2633_s11 = smov 0   ;;  %s2635_s12 = smov 0  }
   0x8   :  { %s2637_s13 = smov 0   ;;  %s2639_s14 = smov 0  }
   0x9 LB: > { %3088 = sst [smem:[#allocation11_spill]] %s2536_s30  ;;  %s2061_s15 = sadd.s32 4294967295, %s2556_s14   ;;  %s2556_s14 = sphi %s2639_s14, %s23_s14   ;;  %s2552_s13 = sphi %s2637_s13, %s3114_s13   ;;  %s2548_s12 = sphi %s2635_s12, %s3113_s12   ;;  %s2544_s11 = sphi %s2633_s11, %s3112_s11   ;;  %s2540_s10 = sphi %s2631_s10, %s3116_s10   ;;  %s2536_s30 = sphi %s2629_s30, %s3115_s30  }
   0xa   : > { %3089 = sst [smem:[#allocation12_spill]] %s2544_s11  ;;  %s2062_s16 = sadd.s32 4294967294, %s2556_s14  }
   0xb   : > { %3090 = sst [smem:[#allocation13_spill]] %s2552_s13  ;;  %s32_s17 = sadd.s32 1, %s2552_s13 }
   0xc   : > { %3091 = sst [smem:[#allocation14_spill]] %s2556_s14  ;;  %s278_s18 = sadd.s32 1, %s2544_s11 }
   0xd   : > { %p33_p0 = scmp.ge.s32.totalorder %s32_s17, 2  ;;  %p288_p1 = scmp.ne.s32.totalorder %s2544_s11, %s2540_s10 }
   0xe   : > { %p289_p2 = scmp.eq.s32.totalorder %s2061_s15, 1  ;;  %p294_p3 = scmp.ne.s32.totalorder %s2540_s10, %s2536_s30 }
   0xf   : > { %s3118_s17 = smov (%p33_p0, %s32_s17), 0  ;;  %p295_p5 = scmp.eq.s32.totalorder %s2062_s16, 1 }
  0x10   : > { %3092 = sst [smem:[#allocation15_spill]] %s3118_s17  ;;  %p2669_p4 = por %p289_p2, %p288_p1 }
  0x11   : > { %s273_s20 = ssub.s32 %s2552_s13, %s3118_s17  ;;  %p2063_p6 = scmp.ge.s32.totalorder %s2556_s14, 1 }
  0x12   : > { %s3093_s19 = scalar_select %p2669_p4, 1, 0 }
  0x13   : > { %p276_p7 = scmp.eq.s32.totalorder %s273_s20, 0  ;;  %p2676_p8 = por %p295_p5, %p294_p3 }
  0x14   : > { %p302_p9 = scmp.lt.s32.totalorder %s2556_s14, 3  ;;  %p2688_p11 = scmp.eq.s32.totalorder %s2061_s15, 0 }
  0x15   : > { %s3094_s21 = scalar_select %p2676_p8, 1, 0 }
  0x16   : > { %s2682_s22 = scalar_select %p276_p7, %s2544_s11, %s278_s18  }
  0x17   : > { %3095 = sst [smem:[#allocation16_spill]] %s3094_s21  ;;  %p2684_p10 = pnand %p2063_p6, %p302_p9 }
  0x18   : > { %3096 = sst [smem:[#allocation17_spill]] %s2682_s22  ;;  %s2558_s25 = smov [#allocation5]  }
  0x19   : > { %s3097_s23 = scalar_select %p2684_p10, 1, 0 }
  0x1a   : > { %s3098_s24 = scalar_select %p2688_p11, 1, 0 }
  0x1b   : > { %p2309_p12 = pneg %p2684_p10  ;;  %s317_s26 = sshll.u32 %s2558_s25, 4  ;;  %s318_s26 = int_to_ptr.vmem [resolvable:$true] %s317_s26 }
  0x1c   : > { %s3100_s0 = sld [smem:[#allocation18_spill]] }
  0x1d   : > { %p2696_p13 = pnand %p2688_p11, %p2309_p12 }
  0x1f   : > { %p2448_p1 = pneg %p2696_p13 }
  0x22   : > { %s2446_s16 = scalar_lea.hbm %s3100_s0, 256 }
  0x23   : > { %p2447_p0 = scmp.ne.s32.totalorder %s3100_s0, %s2446_s16  ;;  %p2453_p5 = scmp.lt.u32.totalorder %s2446_s16, %s3100_s0 }
  0x25   : > { %p2449_p2 = pnand %p2448_p1, %p2447_p0 }
  0x27   : > { %p2450_p3 = pneg %p2449_p2 }
  0x29   : > { %p2455_p6 = pnand %p2453_p5, %p2450_p3 }
  0x2b   : > { %2458 = shalt.err (!%p2455_p6)
}
  0x2c   : > { %s2459_s17 = scalar_lea.vmem %s318_s26, 256  ;;  %p2467_p8 = scmp.lt.s32.totalorder %s318_s26, %s318_s26 }
  0x2d   : > { %p2460_p7 = scmp.ne.s32.totalorder %s318_s26, %s2459_s17  ;;  %p2468_p4 = scmp.lt.s32.totalorder %s2459_s17, %s2459_s17 }
  0x2f   : > { %p2462_p9 = pnand %p2460_p7, %p2448_p1  ;;  %p2469_p11 = por %p2468_p4, %p2467_p8 }
  0x31   : > { %p2463_p12 = pneg %p2462_p9 }
  0x33   : > { %p2470_p10 = pnand %p2469_p11, %p2463_p12 }
  0x35   : > { %2473 = shalt.err (!%p2470_p10)
}
  0x36   : > { %s2559_s28 = smov 128   ;;  %s2560_s29 = smov 8  }
  0x37   : > { %2312 = dma.hbm_to_vmem [thread:$0]  (!%p2696_p13), %s3100_s0, 256, %s318_s26, [#allocation6], %s2559_s28, %s2559_s28, %s2560_s29  }
  0x38   : > { %p3101_p0 = scmp.ne.s32.totalorder %s3097_s23, 0 }
  0x39   : > { %p3102_p2 = scmp.ne.s32.totalorder (!%p3101_p0), %s3098_s24, 0 }
  0x3a   : > { %392 = sbr.rel (%p3101_p0) target bundleno = 4266 (0x10aa), region = 56 }
  0x41   : > { %2527 = dma.done.wait (%p3102_p2), [#allocation6], 256  }
  0x42   : > { %2529 = vsyncadd (%p3102_p2), [#allocation6], 4294967040  ;;  %s3078_s17 = sand.u32 1, %s2540_s10   ;;  %p463_p4 = scmp.lt.s32.totalorder %s2548_s12, 1 }
  0x43   : > { %s2069_s27 = sshll.u32 %s3078_s17, 4  ;;  %s3103_s2 = sld [smem:[#allocation19_spill]] }
  0x44   : > { %s2727_s16 = scalar_select %p463_p4, %s2548_s12, 1 }
  0x45   : > { %s3104_s3 = sld [smem:[#allocation20_spill]]  ;;  %p2079_p8 = scmp.ne.s32.totalorder %s2548_s12, 0 }
  0x46   : > { %s2120_s23 = sshll.u32 %s2727_s16, 4  ;;  %s2123_s26 = sshll.u32 %s2727_s16, 5  ;;  %v499_v0 = vld [vmem:[#allocation5] sm:$0xff] (!%p2079_p8)  ;;  %vm501_vm0 = vcmask (!%p2079_p8), 261120   ;;  %v500_v1 = vld [vmem:[#allocation5 + $0x8] sm:$0xff] (!%p2079_p8)  ;;  %vm510_vm1 = vcmask (!%p2079_p8), 57344  }
  0x47   : > { %s2744_s0 = scalar_lea.vmem %s3067_s4, %s2120_s23  ;;  %s2749_s11 = scalar_lea.vmem %s3068_s5, %s2123_s26  ;;  %v504_v2 = vld [vmem:[%s3064_s1] sm:$0x1] (!%p2079_p8)  ;;  %502 = vst.msk [vmem:[#allocation2] sm:$0xff] (!%p2079_p8), %vm501_vm0, %v499_v0  ;;  %503 = vst.msk [vmem:[#allocation2 + $0x8] sm:$0xff] (!%p2079_p8), %vm501_vm0, %v500_v1  ;;  %v505_v4 = vld [vmem:[%s3064_s1 + $0x1] sm:$0x1] (!%p2079_p8) }
  0x48   : > { %s485_s20 = scalar_lea.vmem %s3069_s6, %s2727_s16  ;;  %s488_s28 = scalar_lea.vmem %s3070_s7, %s2727_s16  ;;  %v506_v3 = vsub.f32 (!%p2079_p8), 1.0, %v504_v2  ;;  %v507_v5 = vsub.f32 (!%p2079_p8), 1.0, %v505_v4 }
  0x49   : > { %s2734_s25 = scalar_lea.vmem %s3103_s2, %s2120_s23  ;;  %s2078_s29 = sshll.u32 %s2727_s16, 3 }
  0x4a   : > { %s2763_s17 = scalar_lea.vmem %s3071_s8, %s2078_s29  ;;  %498 = sbr.rel (%p2079_p8) target bundleno = 81 (0x51), region = 64  ;;  %v508_v6 = vmul.f32 (!%p2079_p8), 1e+10, %v506_v3  ;;  %v509_v7 = vmul.f32 (!%p2079_p8), 1e+10, %v507_v5 }
  0x4b   : > { %s2739_s15 = scalar_lea.vmem %s3104_s3, %s2120_s23  ;;  %s2765_s23 = scalar_lea.vmem [#allocation8], %s2069_s27 }
  0x4c   : > { %511 = vst.msk [vmem:[#allocation4] sm:$0x1] (!%p2079_p8), %vm510_vm1, %v508_v6  ;;  %512 = vst.msk [vmem:[#allocation4 + $0x1] sm:$0x1] (!%p2079_p8), %vm510_vm1, %v509_v7 }
  0x51 PF: > { %v2388_v8 = vld [vmem:[%s2734_s25] sm:$0xff]   ;;  %v2561_v9 = vmov 0.0   ;;  %v2389_v10 = vld [vmem:[%s2734_s25 + $0x8] sm:$0xff]   ;;  %vm2562_vm2 = vmmov 0   ;;  %vm542_vm3 = vcmask 261120   ;;  %s2563_s22 = smov 96  }
  0x52   : > { %2171 = vmatprep.subr.bf16.mxu0 %v2561_v9  ;;  %2179 = vmatprep.subr.bf16.mxu1 %v2561_v9  ;;  %v2780_v11 = vld [vmem:[#allocation2] sm:$0xff]  ;;  %v2782_v12 = vld [vmem:[#allocation2 + $0x8] sm:$0xff]  ;;  %vm592_vm4 = vcmask 64512   ;;  %s2564_s27 = smov 64   ;;  %s2565_s26 = smov 88   ;;  %vm735_vm5 = vcmask 1043456  }
  0x53   : > { %2172 = vmatpush3.bf16.msra.mxu0 %v2388_v8  ;;  %2175 = vmatprep.mubr.msk.bf16.mxu0 %vm2562_vm2, %v2561_v9  ;;  %v515_v13 = vpack.c.bf16 %v2782_v12, %v2780_v11  ;;  %v2080_v14 = vld [vmem:[%s485_s20] ss:$0 sm:$0xff]  ;;  %v2819_v32 = vld [vmem:[#allocation4 + $0x1] ss:$0 sm:$0xff]  ;;  %s2566_s25 = smov 120   ;;  %s2567_s18 = smov 56  }
  0x54   : > { %2173 = vmatprep.subr.bf16.mxu0 %v2561_v9  ;;  %2181 = vmatprep.mubr.msk.bf16.mxu1 %vm2562_vm2, %v2561_v9  ;;  %v2816_v27 = vld [vmem:[#allocation4] ss:$0 sm:$0xff]  ;;  %s2568_s20 = smov 80   ;;  %s2569_s24 = smov 112   ;;  %vm1063_vm6 = vcmask 130112   ;;  %vm1300_vm7 = vcmask 195712  }
  0x55   : > { %s2570_s29 = smov 48   ;;  %s2571_s30 = smov 72   ;;  %vm1537_vm8 = vcmask 261312   ;;  %vm1771_vm13 = vcmask 523264  }
  0x56   : > { %s2572_s13 = smov 104   ;;  %s2573_s2 = smov 40  }
  0x57   : > { %2174 = vmatpush3.bf16.msra.mxu0 %v2389_v10  ;;  %s2574_s21 = smov 8   ;;  %s2575_s3 = smov 16  }
  0x58   : > { %2185 = vmatprep.subr.bf16.mxu0 %v2561_v9  ;;  %s2576_s14 = smov 24   ;;  %p2114_p10 = scmp.ge.s32.totalorder %s2548_s12, 1 }
  0x5a   : > { %2176 = vmatmul.mubr.msk.bf16.vlgmr.msra.gmra.mrb[0].mxu0 %vm542_vm3, %v515_v13 }
  0x5b   : > { %2187 = vmatprep.mubr.msk.bf16.mxu0 %vm2562_vm2, %v2561_v9 }
 0x12d   : > { %v580_v15 = vpop.f32.mrb[0].mxu0 }
 0x12e   : > { %v581_v16 = vadd.f32 %v2080_v14, %v580_v15  ;;  %v2177_v17 = vpop.f32.mrb[1].mxu0 }
 0x12f   : > { %v583_v18 = vpop.f32.mrb[2].mxu0 }
 0x130   : > { %v2798_v19 = vpack.c.bf16 %v581_v16, %v581_v16  ;;  %v584_v20 = vadd.f32 %v2080_v14, %v583_v18  ;;  %v2178_v21 = vpop.f32.mrb[3].mxu0 }
 0x132   : > { %590 = vrot.lane.b32.xlu0 %v2798_v19, %s2563_s22  ;;  %v2801_v22 = vpack.c.bf16 %v584_v20, %v584_v20 }
 0x136   : > { %640 = vrot.lane.b32.xlu0 %v2801_v22, %s2563_s22 }
 0x1a4   : > { %v591_v23 = vpop.permute.xlu0 %590 }
 0x1a5   : > { %v597_v24 = vsel %vm592_vm4, %v591_v23, 0 }
 0x1a6   : > { %2180 = vmatpush3.bf16.xpose.msra.mxu1 %v597_v24 }
 0x1a7   : > { %2191 = vmatprep.subr.bf16.mxu1 %v2561_v9 }
 0x1a8   : > { %v641_v25 = vpop.permute.xlu0 %640 }
 0x1a9   : > { %v646_v26 = vsel %vm592_vm4, %v641_v25, 0 }
 0x1aa   : > { %2186 = vmatpush3.bf16.xpose.msra.mxu0 %v646_v26 }
 0x1ab   : > { %2197 = vmatprep.subr.bf16.mxu0 %v2561_v9 }
 0x1ad   : > { %2182 = vmatmul.mubr.msk.bf16.vlgmr.msra.gmra.mrb[0].mxu1 %vm592_vm4, %v2798_v19 }
 0x1ae   : > { %2193 = vmatprep.mubr.msk.bf16.mxu1 %vm2562_vm2, %v2561_v9 }
 0x1b1   : > { %2188 = vmatmul.mubr.msk.bf16.vlgmr.msra.gmra.mrb[4].mxu0 %vm592_vm4, %v2801_v22 }
 0x1b2   : > { %2199 = vmatprep.mubr.msk.bf16.mxu0 %vm2562_vm2, %v2561_v9 }
 0x280   : > { %v633_v28 = vpop.f32.mrb[0].mxu1 }
 0x281   : > { %v700_v29 = vsub.f32 %v633_v28, %v2816_v27  ;;  %v2183_v30 = vpop.f32.mrb[1].mxu1 }
 0x282   : > { %v636_v31 = vpop.f32.mrb[2].mxu1 }
 0x283   : > { %v702_v33 = vmul.f32 0.17677669, %v700_v29  ;;  %v2184_v34 = vpop.f32.mrb[3].mxu1 }
 0x284   : > { %v682_v35 = vpop.f32.mrb[4].mxu0 }
 0x285   : > { %v701_v36 = vsub.f32 %v682_v35, %v2819_v32  ;;  %v2189_v37 = vpop.f32.mrb[5].mxu0  ;;  %v704_v38 = vsel %vm592_vm4, %v702_v33, -inf }
 0x286   : > { %705 = vmax.xlane.f32.xlu1 %v704_v38  ;;  %v685_v39 = vpop.f32.mrb[6].mxu0 }
 0x287   : > { %v703_v40 = vmul.f32 0.17677669, %v701_v36  ;;  %v2190_v41 = vpop.f32.mrb[7].mxu0 }
 0x289   : > { %v707_v42 = vsel %vm592_vm4, %v703_v40, -inf }
 0x28a   : > { %708 = vmax.xlane.f32.xlu1 %v707_v42 }
 0x29b   : > { %730 = vrot.lane.b32.xlu1 %v2798_v19, %s2564_s27 }
 0x29f   : > { %779 = vrot.lane.b32.xlu1 %v2801_v22, %s2564_s27 }
 0x2a3   : > { %831 = vrot.lane.b32.xlu1 %v2798_v19, %s2565_s26 }
 0x313   : > { %v706_v43 = vpop.xlane.xlu1 %705 }
 0x314   : > { %v710_v44 = vsub.f32 %v702_v33, %v706_v43 }
 0x316   : > { %v712_v45 = vmul.f32 1.442695, %v710_v44 }
 0x317   : > { %v709_v46 = vpop.xlane.xlu1 %708 }
 0x318   : > { %2398 = vpow2.f32 %v712_v45  ;;  %v711_v47 = vsub.f32 %v703_v40, %v709_v46 }
 0x31a   : > { %v714_v48 = vmul.f32 1.442695, %v711_v47 }
 0x31b   : > { %v731_v49 = vpop.permute.xlu1 %730 }
 0x31c   : > { %2400 = vpow2.f32 %v714_v48  ;;  %v737_v50 = vsel %vm735_vm5, %v731_v49, 0 }
 0x31d   : > { %2192 = vmatpush3.bf16.msra.mxu1 %v737_v50 }
 0x31e   : > { %2203 = vmatprep.subr.bf16.mxu1 %v2561_v9 }
 0x31f   : > { %v780_v51 = vpop.permute.xlu1 %779 }
 0x320   : > { %v785_v52 = vsel %vm735_vm5, %v780_v51, 0 }
 0x321   : > { %2198 = vmatpush3.bf16.msra.mxu0 %v785_v52 }
 0x322   : > { %v2399_v53 = vpop.eup %2398  ;;  %2209 = vmatprep.subr.bf16.mxu0 %v2561_v9 }
 0x323   : > { %v716_v54 = vsel %vm592_vm4, %v2399_v53, 0.0  ;;  %v832_v57 = vpop.permute.xlu1 %831 }
 0x324   : > { %717 = vadd.xlane.f32.xlu0 %v716_v54  ;;  %v837_v0 = vsel %vm592_vm4, %v832_v57, 0 }
 0x326   : > { %v2401_v55 = vpop.eup %2400 }
 0x327   : > { %v719_v56 = vsel %vm592_vm4, %v2401_v55, 0.0 }
 0x328   : > { %720 = vadd.xlane.f32.xlu1 %v719_v56 }
 0x339   : > { %881 = vrot.lane.b32.xlu1 %v2801_v22, %s2565_s26 }
 0x33a   : > { %829 = vrot.lane.b32.xlu0 %v2798_v19, %s2566_s25 }
 0x33d   : > { %879 = vrot.lane.b32.xlu1 %v2801_v22, %s2566_s25 }
 0x3b1   : > { %v718_v58 = vpop.xlane.xlu0 %717 }
 0x3b2   : > { %2402 = vrcp.f32 %v718_v58 }
 0x3b5   : > { %v721_v59 = vpop.xlane.xlu1 %720  ;;  %v830_v5 = vpop.permute.xlu0 %829 }
 0x3b6   : > { %2404 = vrcp.f32 %v721_v59 }
 0x3b9   : > { %v882_v2 = vpop.permute.xlu1 %881 }
 0x3ba   : > { %v887_v4 = vsel %vm592_vm4, %v882_v2, 0 }
 0x3bc   : > { %v2403_v60 = vpop.eup %2402 }
 0x3bd   : > { %v726_v61 = vmul.f32 %v2403_v60, %v2399_v53  ;;  %v880_v6 = vpop.permute.xlu1 %879 }
 0x3bf   : > { %v728_v62 = vpack.c.bf16 %v726_v61, %v726_v61 }
 0x3c0   : > { %v2405_v63 = vpop.eup %2404 }
 0x3c1   : > { %v727_v1 = vmul.f32 %v2405_v63, %v2401_v55  ;;  %2194 = vmatmul.mubr.msk.bf16.vlgmr.msra.gmra.mrb[4].mxu1 %vm592_vm4, %v728_v62 }
 0x3c2   : > { %2204 = vmatpush3.bf16.xpose.msra.mxu1 %v837_v0  ;;  %2205 = vmatprep.mubr.msk.bf16.mxu1 %vm2562_vm2, %v2561_v9 }
 0x3c3   : > { %v729_v3 = vpack.c.bf16 %v727_v1, %v727_v1  ;;  %2215 = vmatprep.subr.bf16.mxu1 %v2561_v9 }
 0x3c5   : > { %2200 = vmatmul.mubr.msk.bf16.vlgmr.msra.gmra.mrb[8].mxu0 %vm592_vm4, %v729_v3 }
 0x3c6   : > { %2210 = vmatpush3.bf16.xpose.msra.mxu0 %v887_v4  ;;  %2211 = vmatprep.mubr.msk.bf16.mxu0 %vm2562_vm2, %v2561_v9 }
 0x3c7   : > { %2221 = vmatprep.subr.bf16.mxu0 %v2561_v9 }
 0x3c9   : > { %2206 = vmatmul.mubr.msk.bf16.vlgmr.msra.gmra.mrb[8].mxu1 %vm592_vm4, %v830_v5 }
 0x3ca   : > { %2217 = vmatprep.mubr.msk.bf16.mxu1 %vm2562_vm2, %v2561_v9 }
 0x3cd   : > { %2212 = vmatmul.mubr.msk.bf16.vlgmr.msra.gmra.mrb[12].mxu0 %vm592_vm4, %v880_v6 }
 0x3ce   : > { %2223 = vmatprep.mubr.msk.bf16.mxu0 %vm2562_vm2, %v2561_v9 }
 0x494   : > { %v773_v7 = vpop.f32.mrb[4].mxu1 }
 0x495   : > { %827 = vst.msk [vmem:[#allocation3] sm:$0xff] %vm592_vm4, %v773_v7  ;;  %v2195_v8 = vpop.f32.mrb[5].mxu1 }
 0x496   : > { %v776_v10 = vpop.f32.mrb[6].mxu1 }
 0x497   : > { %v2196_v13 = vpop.f32.mrb[7].mxu1 }
 0x498   : > { %v821_v14 = vpop.f32.mrb[8].mxu0 }
 0x499   : > { %828 = vst.msk [vmem:[#allocation3 + $0x8] sm:$0xff] %vm592_vm4, %v821_v14  ;;  %v2201_v15 = vpop.f32.mrb[9].mxu0 }
 0x49a   : > { %v824_v16 = vpop.f32.mrb[10].mxu0 }
 0x49b   : > { %v2202_v17 = vpop.f32.mrb[11].mxu0 }
 0x49c   : > { %v873_v18 = vpop.f32.mrb[8].mxu1 }
 0x49d   : > { %v929_v20 = vsub.f32 %v873_v18, %v2816_v27  ;;  %v2207_v21 = vpop.f32.mrb[9].mxu1 }
 0x49e   : > { %v876_v23 = vpop.f32.mrb[10].mxu1 }
 0x49f   : > { %v931_v24 = vmul.f32 0.17677669, %v929_v20  ;;  %v2208_v25 = vpop.f32.mrb[11].mxu1 }
 0x4a0   : > { %v923_v26 = vpop.f32.mrb[12].mxu0 }
 0x4a1   : > { %v930_v28 = vsub.f32 %v923_v26, %v2819_v32  ;;  %v2213_v29 = vpop.f32.mrb[13].mxu0  ;;  %v933_v30 = vsel %vm592_vm4, %v931_v24, -inf }
 0x4a2   : > { %934 = vmax.xlane.f32.xlu1 %v933_v30  ;;  %v926_v31 = vpop.f32.mrb[14].mxu0 }
 0x4a3   : > { %v932_v33 = vmul.f32 0.17677669, %v930_v28  ;;  %v2214_v34 = vpop.f32.mrb[15].mxu0 }
 0x4a5   : > { %v936_v35 = vsel %vm592_vm4, %v932_v33, -inf }
 0x4a6   : > { %937 = vmax.xlane.f32.xlu0 %v936_v35 }
 0x4b3   : > { %959 = vrot.lane.b32.xlu1 %v2798_v19, %s2567_s18 }
 0x4b7   : > { %1068 = vrot.lane.b32.xlu1 %v2798_v19, %s2568_s20 }
 0x4bc   : > { %1007 = vrot.lane.b32.xlu0 %v2801_v22, %s2567_s18 }
 0x4c0   : > { %1066 = vrot.lane.b32.xlu0 %v2798_v19, %s2569_s24 }
 0x52f   : > { %v935_v36 = vpop.xlane.xlu1 %934 }
 0x530   : > { %v939_v37 = vsub.f32 %v931_v24, %v935_v36 }
 0x532   : > { %v941_v38 = vmul.f32 1.442695, %v939_v37 }
 0x533   : > { %v960_v39 = vpop.permute.xlu1 %959  ;;  %v938_v40 = vpop.xlane.xlu0 %937 }
 0x534   : > { %2406 = vpow2.f32 %v941_v38  ;;  %v965_v41 = vsel %vm735_vm5, %v960_v39, 0  ;;  %v940_v42 = vsub.f32 %v932_v33, %v938_v40 }
 0x535   : > { %2216 = vmatpush3.bf16.msra.mxu1 %v965_v41 }
 0x536   : > { %v943_v43 = vmul.f32 1.442695, %v940_v42  ;;  %2227 = vmatprep.subr.bf16.mxu1 %v2561_v9 }
 0x537   : > { %v1008_v44 = vpop.permute.xlu0 %1007  ;;  %v1069_v50 = vpop.permute.xlu1 %1068 }
 0x538   : > { %2408 = vpow2.f32 %v943_v43  ;;  %v1013_v45 = vsel %vm735_vm5, %v1008_v44, 0  ;;  %v1074_v57 = vsel %vm592_vm4, %v1069_v50, 0 }
 0x539   : > { %2222 = vmatpush3.bf16.msra.mxu0 %v1013_v45 }
 0x53a   : > { %2233 = vmatprep.subr.bf16.mxu0 %v2561_v9 }
 0x53b   : > { %v1067_v62 = vpop.permute.xlu0 %1066 }
 0x53e   : > { %v2407_v46 = vpop.eup %2406 }
 0x53f   : > { %v945_v47 = vsel %vm592_vm4, %v2407_v46, 0.0 }
 0x540   : > { %946 = vadd.xlane.f32.xlu1 %v945_v47 }
 0x542   : > { %v2409_v48 = vpop.eup %2408 }
 0x543   : > { %v948_v49 = vsel %vm592_vm4, %v2409_v48, 0.0 }
 0x544   : > { %949 = vadd.xlane.f32.xlu1 %v948_v49 }
 0x555   : > { %1118 = vrot.lane.b32.xlu1 %v2801_v22, %s2568_s20 }
 0x559   : > { %1116 = vrot.lane.b32.xlu1 %v2801_v22, %s2569_s24 }
 0x5cd   : > { %v947_v51 = vpop.xlane.xlu1 %946 }
 0x5ce   : > { %2410 = vrcp.f32 %v947_v51 }
 0x5d1   : > { %v950_v52 = vpop.xlane.xlu1 %949 }
 0x5d2   : > { %2412 = vrcp.f32 %v950_v52 }
 0x5d5   : > { %v1119_v59 = vpop.permute.xlu1 %1118 }
 0x5d6   : > { %v1124_v61 = vsel %vm592_vm4, %v1119_v59, 0 }
 0x5d8   : > { %v2411_v53 = vpop.eup %2410 }
 0x5d9   : > { %v955_v54 = vmul.f32 %v2411_v53, %v2407_v46  ;;  %v1117_v63 = vpop.permute.xlu1 %1116 }
 0x5db   : > { %v957_v55 = vpack.c.bf16 %v955_v54, %v955_v54 }
 0x5dc   : > { %v2413_v56 = vpop.eup %2412 }
 0x5dd   : > { %v956_v58 = vmul.f32 %v2413_v56, %v2409_v48  ;;  %2218 = vmatmul.mubr.msk.bf16.vlgmr.msra.gmra.mrb[12].mxu1 %vm592_vm4, %v957_v55 }
 0x5de   : > { %2228 = vmatpush3.bf16.xpose.msra.mxu1 %v1074_v57  ;;  %2229 = vmatprep.mubr.msk.bf16.mxu1 %vm2562_vm2, %v2561_v9 }
 0x5df   : > { %v958_v60 = vpack.c.bf16 %v956_v58, %v956_v58  ;;  %2239 = vmatprep.subr.bf16.mxu1 %v2561_v9 }
 0x5e1   : > { %2224 = vmatmul.mubr.msk.bf16.vlgmr.msra.gmra.mrb[16].mxu0 %vm592_vm4, %v958_v60 }
 0x5e2   : > { %2234 = vmatpush3.bf16.xpose.msra.mxu0 %v1124_v61  ;;  %2235 = vmatprep.mubr.msk.bf16.mxu0 %vm2562_vm2, %v2561_v9 }
 0x5e3   : > { %2245 = vmatprep.subr.bf16.mxu0 %v2561_v9 }
 0x5e5   : > { %2230 = vmatmul.mubr.msk.bf16.vlgmr.msra.gmra.mrb[16].mxu1 %vm592_vm4, %v1067_v62 }
 0x5e6   : > { %2241 = vmatprep.mubr.msk.bf16.mxu1 %vm2562_vm2, %v2561_v9 }
 0x5e9   : > { %2236 = vmatmul.mubr.msk.bf16.vlgmr.msra.gmra.mrb[20].mxu0 %vm592_vm4, %v1117_v63 }
 0x5ea   : > { %2247 = vmatprep.mubr.msk.bf16.mxu0 %vm2562_vm2, %v2561_v9 }
 0x6b0   : > { %v2886_v0 = vpop.f32.mrb[12].mxu1 }
 0x6b1   : > { %v2219_v1 = vpop.f32.mrb[13].mxu1 }
 0x6b2   : > { %v1004_v2 = vpop.f32.mrb[14].mxu1 }
 0x6b3   : > { %v2220_v3 = vpop.f32.mrb[15].mxu1 }
 0x6b4   : > { %v2888_v4 = vpop.f32.mrb[16].mxu0 }
 0x6b5   : > { %v2225_v5 = vpop.f32.mrb[17].mxu0 }
 0x6b6   : > { %v1052_v6 = vpop.f32.mrb[18].mxu0 }
 0x6b7   : > { %v2226_v7 = vpop.f32.mrb[19].mxu0 }
 0x6b8   : > { %v1110_v8 = vpop.f32.mrb[16].mxu1 }
 0x6b9   : > { %v1166_v10 = vsub.f32 %v1110_v8, %v2816_v27  ;;  %v2231_v13 = vpop.f32.mrb[17].mxu1 }
 0x6ba   : > { %v1113_v14 = vpop.f32.mrb[18].mxu1 }
 0x6bb   : > { %v1168_v15 = vmul.f32 0.17677669, %v1166_v10  ;;  %v2232_v16 = vpop.f32.mrb[19].mxu1 }
 0x6bc   : > { %v1160_v17 = vpop.f32.mrb[20].mxu0 }
 0x6bd   : > { %v1167_v18 = vsub.f32 %v1160_v17, %v2819_v32  ;;  %v2237_v20 = vpop.f32.mrb[21].mxu0  ;;  %v1170_v21 = vsel %vm592_vm4, %v1168_v15, -inf }
 0x6be   : > { %1171 = vmax.xlane.f32.xlu0 %v1170_v21  ;;  %v1163_v23 = vpop.f32.mrb[22].mxu0 }
 0x6bf   : > { %v1169_v24 = vmul.f32 0.17677669, %v1167_v18  ;;  %v2238_v25 = vpop.f32.mrb[23].mxu0 }
 0x6c1   : > { %v1173_v26 = vsel %vm592_vm4, %v1169_v24, -inf }
 0x6c2   : > { %1174 = vmax.xlane.f32.xlu1 %v1173_v26 }
 0x6d3   : > { %1196 = vrot.lane.b32.xlu1 %v2798_v19, %s2570_s29 }
 0x6d7   : > { %1305 = vrot.lane.b32.xlu1 %v2798_v19, %s2571_s30 }
 0x6db   : > { %1355 = vrot.lane.b32.xlu1 %v2801_v22, %s2571_s30 }
 0x6df   : > { %1353 = vrot.lane.b32.xlu1 %v2801_v22, %s2572_s13 }
 0x74b   : > { %v1172_v28 = vpop.xlane.xlu0 %1171 }
 0x74c   : > { %v1176_v29 = vsub.f32 %v1168_v15, %v1172_v28 }
 0x74e   : > { %v1178_v30 = vmul.f32 1.442695, %v1176_v29 }
 0x74f   : > { %v1175_v31 = vpop.xlane.xlu1 %1174 }
 0x750   : > { %2414 = vpow2.f32 %v1178_v30  ;;  %v1177_v33 = vsub.f32 %v1169_v24, %v1175_v31 }
 0x752   : > { %v1180_v34 = vmul.f32 1.442695, %v1177_v33 }
 0x753   : > { %v1197_v35 = vpop.permute.xlu1 %1196 }
 0x754   : > { %2416 = vpow2.f32 %v1180_v34  ;;  %v1202_v36 = vsel %vm735_vm5, %v1197_v35, 0 }
 0x755   : > { %2240 = vmatpush3.bf16.msra.mxu1 %v1202_v36 }
 0x756   : > { %2251 = vmatprep.subr.bf16.mxu1 %v2561_v9 }
 0x757   : > { %v1306_v46 = vpop.permute.xlu1 %1305 }
 0x758   : > { %v1311_v50 = vsel %vm592_vm4, %v1306_v46, 0 }
 0x75a   : > { %v2415_v37 = vpop.eup %2414 }
 0x75b   : > { %v1182_v38 = vsel %vm592_vm4, %v2415_v37, 0.0  ;;  %v1356_v52 = vpop.permute.xlu1 %1355 }
 0x75c   : > { %1183 = vadd.xlane.f32.xlu0 %v1182_v38  ;;  %v1361_v54 = vsel %vm592_vm4, %v1356_v52, 0 }
 0x75e   : > { %v2417_v39 = vpop.eup %2416 }
 0x75f   : > { %v1185_v40 = vsel %vm592_vm4, %v2417_v39, 0.0  ;;  %v1354_v56 = vpop.permute.xlu1 %1353 }
 0x760   : > { %1186 = vadd.xlane.f32.xlu0 %v1185_v40 }
 0x776   : > { %1244 = vrot.lane.b32.xlu0 %v2801_v22, %s2570_s29 }
 0x77a   : > { %1303 = vrot.lane.b32.xlu0 %v2798_v19, %s2572_s13 }
 0x7e9   : > { %v1184_v41 = vpop.xlane.xlu0 %1183 }
 0x7ea   : > { %2418 = vrcp.f32 %v1184_v41 }
 0x7ed   : > { %v1187_v42 = vpop.xlane.xlu0 %1186 }
 0x7ee   : > { %2420 = vrcp.f32 %v1187_v42 }
 0x7f1   : > { %v1245_v43 = vpop.permute.xlu0 %1244 }
 0x7f2   : > { %v1250_v44 = vsel %vm735_vm5, %v1245_v43, 0 }
 0x7f3   : > { %2246 = vmatpush3.bf16.msra.mxu0 %v1250_v44  ;;  %v2390_v44 = vld [vmem:[%s2739_s15] sm:$0xff]  }
 0x7f4   : > { %v2419_v45 = vpop.eup %2418  ;;  %2257 = vmatprep.subr.bf16.mxu0 %v2561_v9 }
 0x7f5   : > { %v1192_v47 = vmul.f32 %v2419_v45, %v2415_v37  ;;  %v1304_v55 = vpop.permute.xlu0 %1303  ;;  %v2391_v45 = vld [vmem:[%s2739_s15 + $0x8] sm:$0xff]  }
 0x7f7   : > { %v1194_v48 = vpack.c.bf16 %v1192_v47, %v1192_v47 }
 0x7f8   : > { %v2421_v49 = vpop.eup %2420 }
 0x7f9   : > { %v1193_v51 = vmul.f32 %v2421_v49, %v2417_v39  ;;  %2242 = vmatmul.mubr.msk.bf16.vlgmr.msra.gmra.mrb[20].mxu1 %vm592_vm4, %v1194_v48 }
 0x7fa   : > { %2252 = vmatpush3.bf16.xpose.msra.mxu1 %v1311_v50  ;;  %2253 = vmatprep.mubr.msk.bf16.mxu1 %vm2562_vm2, %v2561_v9 }
 0x7fb   : > { %v1195_v53 = vpack.c.bf16 %v1193_v51, %v1193_v51  ;;  %2263 = vmatprep.subr.bf16.mxu1 %v2561_v9 }
 0x7fd   : > { %2248 = vmatmul.mubr.msk.bf16.vlgmr.msra.gmra.mrb[24].mxu0 %vm592_vm4, %v1195_v53 }
 0x7fe   : > { %2258 = vmatpush3.bf16.xpose.msra.mxu0 %v1361_v54  ;;  %2259 = vmatprep.mubr.msk.bf16.mxu0 %vm2562_vm2, %v2561_v9 }
 0x7ff   : > { %2269 = vmatprep.subr.bf16.mxu0 %v2561_v9 }
 0x801   : > { %2254 = vmatmul.mubr.msk.bf16.vlgmr.msra.gmra.mrb[24].mxu1 %vm592_vm4, %v1304_v55 }
 0x802   : > { %2265 = vmatprep.mubr.msk.bf16.mxu1 %vm2562_vm2, %v2561_v9 }
 0x805   : > { %2260 = vmatmul.mubr.msk.bf16.vlgmr.msra.gmra.mrb[28].mxu0 %vm592_vm4, %v1354_v56 }
 0x806   : > { %2271 = vmatprep.mubr.msk.bf16.mxu0 %vm2562_vm2, %v2561_v9 }
 0x8cc   : > { %v1238_v57 = vpop.f32.mrb[20].mxu1 }
 0x8cd   : > { %v2243_v58 = vpop.f32.mrb[21].mxu1 }
 0x8ce   : > { %v1241_v59 = vpop.f32.mrb[22].mxu1 }
 0x8cf   : > { %v2244_v60 = vpop.f32.mrb[23].mxu1  ;;  %v1547_v59 = vlaneseq }
 0x8d0   : > { %v1286_v61 = vpop.f32.mrb[24].mxu0 }
 0x8d1   : > { %v2249_v62 = vpop.f32.mrb[25].mxu0  ;;  %v2955_v60 = vshrl.u32 %v1547_v59, 7 }
 0x8d2   : > { %v1289_v63 = vpop.f32.mrb[26].mxu0  ;;  %v2959_v62 = vld [vmem:[%s2763_s17] sm:$0x3f] }
 0x8d3   : > { %v2250_v1 = vpop.f32.mrb[27].mxu0 }
 0x8d4   : > { %v1347_v2 = vpop.f32.mrb[24].mxu1 }
 0x8d5   : > { %v1403_v3 = vsub.f32 %v1347_v2, %v2816_v27  ;;  %v2255_v5 = vpop.f32.mrb[25].mxu1 }
 0x8d6   : > { %v1350_v6 = vpop.f32.mrb[26].mxu1 }
 0x8d7   : > { %v1405_v7 = vmul.f32 0.17677669, %v1403_v3  ;;  %v2256_v8 = vpop.f32.mrb[27].mxu1 }
 0x8d8   : > { %v1397_v10 = vpop.f32.mrb[28].mxu0 }
 0x8d9   : > { %v1404_v13 = vsub.f32 %v1397_v10, %v2819_v32  ;;  %v2261_v14 = vpop.f32.mrb[29].mxu0  ;;  %v1407_v15 = vsel %vm592_vm4, %v1405_v7, -inf }
 0x8da   : > { %1408 = vmax.xlane.f32.xlu0 %v1407_v15  ;;  %v1400_v16 = vpop.f32.mrb[30].mxu0 }
 0x8db   : > { %v1406_v17 = vmul.f32 0.17677669, %v1404_v13  ;;  %v2262_v18 = vpop.f32.mrb[31].mxu0 }
 0x8dd   : > { %v1410_v20 = vsel %vm592_vm4, %v1406_v17, -inf }
 0x8de   : > { %1411 = vmax.xlane.f32.xlu1 %v1410_v20 }
 0x8ef   : > { %1433 = vrot.lane.b32.xlu1 %v2798_v19, %s2573_s2 }
 0x8f3   : > { %1057 = vrot.lane.b32.xlu1 %v2886_v0, %s2574_s21 }
 0x8f7   : > { %1059 = vrot.lane.b32.xlu1 %v2888_v4, %s2574_s21 }
 0x8fb   : > { %1296 = vrot.lane.b32.xlu1 %v1286_v61, %s2575_s3  ;;  %v1549_v61 = vsub.s32 0, %v2955_v60 }
 0x8fd   : > { %v1550_v63 = vrot.slane %v2959_v62, %v1549_v61 }
 0x967   : > { %v1409_v27 = vpop.xlane.xlu0 %1408 }
 0x968   : > { %v1413_v32 = vsub.f32 %v1405_v7, %v1409_v27 }
 0x96a   : > { %v1415_v21 = vmul.f32 1.442695, %v1413_v32 }
 0x96b   : > { %v1412_v23 = vpop.xlane.xlu1 %1411 }
 0x96c   : > { %2422 = vpow2.f32 %v1415_v21  ;;  %v1414_v24 = vsub.f32 %v1406_v17, %v1412_v23  ;;  %v2392_v23 = vld [vmem:[%s2744_s0] sm:$0xff]  }
 0x96e   : > { %v1417_v25 = vmul.f32 1.442695, %v1414_v24  ;;  %v2393_v24 = vld [vmem:[%s2744_s0 + $0x8] sm:$0xff]  }
 0x96f   : > { %v1434_v26 = vpop.permute.xlu1 %1433 }
 0x970   : > { %2424 = vpow2.f32 %v1417_v25  ;;  %v1439_v19 = vsel %vm735_vm5, %v1434_v26, 0  ;;  %v2394_v25 = vld [vmem:[%s2749_s11] sm:$0xff]   ;;  %v2395_v26 = vld [vmem:[%s2749_s11 + $0x8] sm:$0xff]  }
 0x971   : > { %2264 = vmatpush3.bf16.msra.mxu1 %v1439_v19 }
 0x972   : > { %2275 = vmatprep.subr.bf16.mxu1 %v2561_v9 }
 0x973   : > { %v1058_v0 = vpop.permute.xlu1 %1057 }
 0x974   : > { %1064 = vst.msk [vmem:[#allocation3] sm:$0xff] %vm1063_vm6, %v1058_v0 }
 0x976   : > { %v2423_v4 = vpop.eup %2422 }
 0x977   : > { %v1060_v28 = vpop.permute.xlu1 %1059  ;;  %v1419_v29 = vsel %vm592_vm4, %v2423_v4, 0.0 }
 0x978   : > { %1065 = vst.msk [vmem:[#allocation3 + $0x8] sm:$0xff] %vm1063_vm6, %v1060_v28  ;;  %1420 = vadd.xlane.f32.xlu0 %v1419_v29 }
 0x97a   : > { %v2425_v30 = vpop.eup %2424 }
 0x97b   : > { %v1297_v31 = vpop.permute.xlu1 %1296  ;;  %v1422_v33 = vsel %vm592_vm4, %v2425_v30, 0.0 }
 0x97c   : > { %1302 = vst.msk [vmem:[#allocation3 + $0x8] sm:$0xff] %vm1300_vm7, %v1297_v31  ;;  %1423 = vadd.xlane.f32.xlu0 %v1422_v33 }
 0x992   : > { %1481 = vrot.lane.b32.xlu0 %v2801_v22, %s2573_s2 }
 0x996   : > { %1294 = vrot.lane.b32.xlu0 %v1238_v57, %s2575_s3 }
 0xa05   : > { %v1421_v34 = vpop.xlane.xlu0 %1420 }
 0xa06   : > { %2426 = vrcp.f32 %v1421_v34 }
 0xa09   : > { %v1424_v35 = vpop.xlane.xlu0 %1423 }
 0xa0a   : > { %2428 = vrcp.f32 %v1424_v35 }
 0xa0d   : > { %v1482_v36 = vpop.permute.xlu0 %1481 }
 0xa0e   : > { %v1487_v37 = vsel %vm735_vm5, %v1482_v36, 0 }
 0xa0f   : > { %2270 = vmatpush3.bf16.msra.mxu0 %v1487_v37 }
 0xa10   : > { %v2427_v38 = vpop.eup %2426  ;;  %2283 = vmatprep.subr.bf16.mxu0 %v2561_v9 }
 0xa11   : > { %v1429_v39 = vmul.f32 %v2427_v38, %v2423_v4  ;;  %v1295_v40 = vpop.permute.xlu0 %1294 }
 0xa12   : > { %1301 = vst.msk [vmem:[#allocation3] sm:$0xff] %vm1300_vm7, %v1295_v40 }
 0xa13   : > { %v1431_v41 = vpack.c.bf16 %v1429_v39, %v1429_v39 }
 0xa14   : > { %v2429_v22 = vpop.eup %2428 }
 0xa15   : > { %v1430_v42 = vmul.f32 %v2429_v22, %v2425_v30  ;;  %2266 = vmatmul.mubr.msk.bf16.vlgmr.msra.gmra.mrb[28].mxu1 %vm592_vm4, %v1431_v41  ;;  %v1654_v22 = vsub.s32 2, %v2955_v60 }
 0xa16   : > { %2279 = vmatprep.mubr.msk.bf16.mxu1 %vm2562_vm2, %v2561_v9  ;;  %2276 = vmatpush3.bf16.msra.mxu1 %v2390_v44 }
 0xa17   : > { %v1432_v43 = vpack.c.bf16 %v1430_v42, %v1430_v42  ;;  %2277 = vmatprep.subr.bf16.mxu1 %v2561_v9  ;;  %v1655_v44 = vrot.slane %v2959_v62, %v1654_v22 }
 0xa19   : > { %2272 = vmatmul.mubr.msk.bf16.vlgmr.msra.gmra.mrb[32].mxu0 %vm592_vm4, %v1432_v43 }
 0xa1a   : > { %2287 = vmatprep.mubr.msk.bf16.mxu0 %vm2562_vm2, %v2561_v9  ;;  %2278 = vmatpush3.bf16.msra.mxu1 %v2391_v45  ;;  %v1660_v45 = vsub.s32 3, %v2955_v60 }
 0xa1b   : > { %2291 = vmatprep.subr.bf16.mxu1 %v2561_v9  ;;  %2284 = vmatpush3.bf16.msra.mxu0 %v2392_v23 }
 0xa1c   : > { %2285 = vmatprep.subr.bf16.mxu0 %v2561_v9 }
 0xa1f   : > { %2286 = vmatpush3.bf16.msra.mxu0 %v2393_v24 }
 0xae8   : > { %v1475_v46 = vpop.f32.mrb[28].mxu1 }
 0xae9   : > { %1531 = vrot.lane.b32.xlu0 %v1475_v46, %s2576_s14  ;;  %v2267_v47 = vpop.f32.mrb[29].mxu1 }
 0xaea   : > { %v1478_v48 = vpop.f32.mrb[30].mxu1 }
 0xaeb   : > { %v2268_v49 = vpop.f32.mrb[31].mxu1 }
 0xaec   : > { %v1523_v50 = vpop.f32.mrb[32].mxu0  ;;  %v1661_v49 = vrot.slane %v2959_v62, %v1660_v45 }
 0xaed   : > { %1533 = vrot.lane.b32.xlu1 %v1523_v50, %s2576_s14  ;;  %v2273_v51 = vpop.f32.mrb[33].mxu0 }
 0xaee   : > { %v1526_v52 = vpop.f32.mrb[34].mxu0 }
 0xaef   : > { %v2274_v53 = vpop.f32.mrb[35].mxu0 }
 0xb5b   : > { %v1532_v54 = vpop.permute.xlu0 %1531 }
 0xb5c   : > { %1538 = vst.msk [vmem:[#allocation3] sm:$0xff] %vm1537_vm8, %v1532_v54  ;;  %v2396_v54 = vld [vmem:[%s2749_s11 + $0x10] sm:$0xff]  }
 0xb5f   : > { %v1534_v55 = vpop.permute.xlu1 %1533 }
 0xb60   : > { %1539 = vst.msk [vmem:[#allocation3 + $0x8] sm:$0xff] %vm1537_vm8, %v1534_v55  ;;  %v2397_v55 = vld [vmem:[%s2749_s11 + $0x18] sm:$0xff]  }
 0xb63   : > { %v1540_v56 = vld [vmem:[#allocation3] sm:$0xff] }
 0xb67   : > { %v1541_v57 = vld [vmem:[#allocation3 + $0x8] sm:$0xff] }
 0xb68   : > { %v1542_v58 = vpack.c.bf16 %v1541_v57, %v1540_v56  ;;  %v2105_v56 = vld [vmem:[%s488_s28] ss:$0 sm:$0xff] }
 0xb6a   : > { %2280 = vmatmul.mubr.msk.bf16.vlgmr.msra.gmra.mrb[32].mxu1 %vm542_vm3, %v1542_v58 }
 0xb6b   : > { %2299 = vmatprep.mubr.msk.bf16.mxu1 %vm2562_vm2, %v2561_v9  ;;  %2292 = vmatpush3.bf16.msra.mxu1 %v2394_v25 }
 0xb6c   : > { %2293 = vmatprep.subr.bf16.mxu1 %v2561_v9 }
 0xb6f   : > { %2294 = vmatpush3.bf16.msra.mxu1 %v2395_v26 }
 0xb70   : > { %2295 = vmatprep.subr.bf16.mxu1 %v2561_v9 }
 0xb73   : > { %2296 = vmatpush3.bf16.msra.mxu1 %v2396_v54 }
 0xb74   : > { %2297 = vmatprep.subr.bf16.mxu1 %v2561_v9  ;;  %v1745_v9 = vsub.s32 1, %v2955_v60 }
 0xb77   : > { %2298 = vmatpush3.bf16.msra.mxu1 %v2397_v55 }
 0xc3d   : > { %v1600_v1 = vpop.f32.mrb[32].mxu1 }
 0xc3e   : > { %v1601_v2 = vadd.f32 %v1600_v1, %v1550_v63  ;;  %v2281_v3 = vpop.f32.mrb[33].mxu1 }
 0xc3f   : > { %v1603_v5 = vpop.f32.mrb[34].mxu1 }
 0xc40   : > { %v1604_v6 = vadd.f32 %v1603_v5, %v1550_v63  ;;  %v2282_v7 = vpop.f32.mrb[35].mxu1  ;;  %v1607_v8 = vadd.f32 %v1601_v2, %v2780_v11 }
 0xc42   : > { %v1609_v10 = vsel %vm542_vm3, %v1607_v8, 0.0  ;;  %v1608_v13 = vadd.f32 %v1604_v6, %v2782_v12  ;;  %v1746_v6 = vrot.slane %v2959_v62, %v1745_v9 }
 0xc43   : > { %1610 = vadd.xlane.f32.xlu0 %v1609_v10 }
 0xc44   : > { %v1612_v14 = vsel %vm542_vm3, %v1608_v13, 0.0 }
 0xc45   : > { %1613 = vadd.xlane.f32.xlu1 %v1612_v14 }
 0xcd0   : > { %v1611_v15 = vpop.xlane.xlu0 %1610 }
 0xcd1   : > { %v1616_v16 = vmul.f32 0.03125, %v1611_v15 }
 0xcd2   : > { %v1614_v17 = vpop.xlane.xlu1 %1613 }
 0xcd3   : > { %v1618_v18 = vsub.f32 %v1607_v8, %v1616_v16  ;;  %v1617_v20 = vmul.f32 0.03125, %v1614_v17 }
 0xcd5   : > { %v1619_v27 = vsub.f32 %v1608_v13, %v1617_v20  ;;  %v1620_v32 = vmul.f32 %v1618_v18, %v1618_v18 }
 0xcd7   : > { %v1622_v11 = vsel %vm542_vm3, %v1620_v32, 0.0  ;;  %v1621_v21 = vmul.f32 %v1619_v27, %v1619_v27 }
 0xcd8   : > { %1623 = vadd.xlane.f32.xlu0 %v1622_v11 }
 0xcd9   : > { %v1625_v12 = vsel %vm542_vm3, %v1621_v21, 0.0 }
 0xcdc   : > { %1626 = vadd.xlane.f32.xlu0 %v1625_v12 }
 0xd65   : > { %v1624_v19 = vpop.xlane.xlu0 %1623 }
 0xd66   : > { %v1628_v0 = vmul.f32 0.032258064, %v1624_v19 }
 0xd68   : > { %2430 = vrsqrt.f32 %v1628_v0  ;;  %vm1632_vm9 = vcmp.eq.f32.partialorder %v1628_v0, inf  ;;  %v1635_v31 = vand.u32 2147483648, %v1628_v0  ;;  %vm1634_vm10 = vcmp.eq.f32.partialorder %v1628_v0, 0.0 }
 0xd69   : > { %v1627_v4 = vpop.xlane.xlu0 %1626 }
 0xd6a   : > { %v1629_v28 = vmul.f32 0.032258064, %v1627_v4 }
 0xd6c   : > { %2432 = vrsqrt.f32 %v1629_v28  ;;  %vm1639_vm11 = vcmp.eq.f32.partialorder %v1629_v28, inf  ;;  %v1642_v38 = vand.u32 2147483648, %v1629_v28  ;;  %vm1641_vm12 = vcmp.eq.f32.partialorder %v1629_v28, 0.0 }
 0xd72   : > { %v2431_v29 = vpop.eup %2430 }
 0xd73   : > { %v1631_v30 = vmul.f32 %v2431_v29, %v1628_v0 }
 0xd75   : > { %v1633_v33 = vsel %vm1632_vm9, %v1628_v0, %v1631_v30 }
 0xd76   : > { %v2433_v34 = vpop.eup %2432  ;;  %v1636_v35 = vsel %vm1634_vm10, %v1635_v31, %v1633_v33 }
 0xd77   : > { %v1644_v36 = vadd.f32 1e-06, %v1636_v35  ;;  %v1638_v37 = vmul.f32 %v2433_v34, %v1629_v28 }
 0xd79   : > { %2434 = vrcp.f32 %v1644_v36  ;;  %v1640_v39 = vsel %vm1639_vm11, %v1629_v28, %v1638_v37 }
 0xd7a   : > { %v1643_v40 = vsel %vm1641_vm12, %v1642_v38, %v1640_v39 }
 0xd7b   : > { %v1645_v41 = vadd.f32 1e-06, %v1643_v40 }
 0xd7d   : > { %2436 = vrcp.f32 %v1645_v41 }
 0xd83   : > { %v2435_v42 = vpop.eup %2434 }
 0xd84   : > { %v1650_v43 = vmul.f32 %v2435_v42, %v1618_v18  ;;  %v1862_v42 = vsub.s32 4, %v2955_v60 }
 0xd86   : > { %v1656_v48 = vmul.f32 %v1655_v44, %v1650_v43  ;;  %v1868_v43 = vsub.s32 5, %v2955_v60 }
 0xd87   : > { %v2437_v46 = vpop.eup %2436 }
 0xd88   : > { %v1651_v47 = vmul.f32 %v2437_v46, %v1619_v27  ;;  %v1662_v51 = vadd.f32 %v1661_v49, %v1656_v48  ;;  %v1869_v46 = vrot.slane %v2959_v62, %v1868_v43 }
 0xd8a   : > { %v1657_v50 = vmul.f32 %v1655_v44, %v1651_v47  ;;  %v1863_v44 = vrot.slane %v2959_v62, %v1862_v42 }
 0xd8c   : > { %v1663_v52 = vadd.f32 %v1661_v49, %v1657_v50 }
 0xd8e   : > { %v1664_v53 = vpack.c.bf16 %v1663_v52, %v1662_v51 }
 0xd90   : > { %2288 = vmatmul.mubr.msk.bf16.vlgmr.msra.gmra.mrb[36].mxu0 %vm542_vm3, %v1664_v53 }
 0xe63   : > { %v1725_v57 = vpop.f32.mrb[36].mxu0 }
 0xe64   : > { %v1726_v58 = vadd.f32 %v2105_v56, %v1725_v57  ;;  %v2289_v59 = vpop.f32.mrb[37].mxu0 }
 0xe65   : > { %v1728_v61 = vpop.f32.mrb[38].mxu0 }
 0xe66   : > { %v1729_v63 = vadd.f32 %v2105_v56, %v1728_v61  ;;  %v2290_v1 = vpop.f32.mrb[39].mxu0  ;;  %v1732_v2 = vmax.f32 %v1726_v58, 0.0 }
 0xe68   : > { %v1733_v3 = vmax.f32 %v1729_v63, 0.0 }
 0xe6a   : > { %v1734_v5 = vpack.c.bf16 %v1733_v3, %v1732_v2 }
 0xe6c   : > { %2300 = vmatmul.mubr.msk.bf16.vlgmr.msra.gmra.mrb[36].mxu1 %vm1771_vm13, %v1734_v5 }
 0xf3f   : > { %v1809_v7 = vpop.f32.mrb[36].mxu1 }
 0xf40   : > { %v1810_v8 = vadd.f32 %v1809_v7, %v1746_v6  ;;  %v2301_v10 = vpop.f32.mrb[37].mxu1 }
 0xf41   : > { %v1812_v13 = vpop.f32.mrb[38].mxu1 }
 0xf42   : > { %v1813_v14 = vadd.f32 %v1812_v13, %v1746_v6  ;;  %v2302_v15 = vpop.f32.mrb[39].mxu1  ;;  %v1816_v16 = vadd.f32 %v1810_v8, %v1662_v51 }
 0xf44   : > { %v1818_v17 = vsel %vm542_vm3, %v1816_v16, 0.0  ;;  %v1817_v18 = vadd.f32 %v1813_v14, %v1663_v52 }
 0xf45   : > { %1819 = vadd.xlane.f32.xlu1 %v1818_v17 }
 0xf46   : > { %v1821_v20 = vsel %vm542_vm3, %v1817_v18, 0.0 }
 0xf47   : > { %1822 = vadd.xlane.f32.xlu0 %v1821_v20 }
 0xfd2   : > { %v1820_v27 = vpop.xlane.xlu1 %1819 }
 0xfd3   : > { %v1824_v32 = vmul.f32 0.03125, %v1820_v27 }
 0xfd4   : > { %v1823_v11 = vpop.xlane.xlu0 %1822 }
 0xfd5   : > { %v1826_v21 = vsub.f32 %v1816_v16, %v1824_v32  ;;  %v1825_v12 = vmul.f32 0.03125, %v1823_v11 }
 0xfd7   : > { %v1827_v23 = vsub.f32 %v1817_v18, %v1825_v12  ;;  %v1828_v24 = vmul.f32 %v1826_v21, %v1826_v21 }
 0xfd9   : > { %v1830_v25 = vsel %vm542_vm3, %v1828_v24, 0.0  ;;  %v1829_v26 = vmul.f32 %v1827_v23, %v1827_v23 }
 0xfda   : > { %1831 = vadd.xlane.f32.xlu1 %v1830_v25 }
 0xfdb   : > { %v1833_v19 = vsel %vm542_vm3, %v1829_v26, 0.0 }
 0xfdc   : > { %1834 = vadd.xlane.f32.xlu0 %v1833_v19 }
0x1067   : > { %v1832_v0 = vpop.xlane.xlu1 %1831 }
0x1068   : > { %v1836_v4 = vmul.f32 0.032258064, %v1832_v0 }
0x1069   : > { %v1835_v28 = vpop.xlane.xlu0 %1834 }
0x106a   : > { %2438 = vrsqrt.f32 %v1836_v4  ;;  %v1837_v29 = vmul.f32 0.032258064, %v1835_v28  ;;  %vm1840_vm14 = vcmp.eq.f32.partialorder %v1836_v4, inf  ;;  %v1843_v33 = vand.u32 2147483648, %v1836_v4 }
0x106b   : > { %vm1842_vm15 = vcmp.eq.f32.partialorder %v1836_v4, 0.0 }
0x106c   : > { %2440 = vrsqrt.f32 %v1837_v29  ;;  %vm1847_vm0 = vcmp.eq.f32.partialorder %v1837_v29, inf  ;;  %v1850_v39 = vand.u32 2147483648, %v1837_v29  ;;  %vm1849_vm1 = vcmp.eq.f32.partialorder %v1837_v29, 0.0 }
0x1074   : > { %v2439_v30 = vpop.eup %2438 }
0x1075   : > { %v1839_v31 = vmul.f32 %v2439_v30, %v1836_v4 }
0x1076   : > { %v2441_v34 = vpop.eup %2440 }
0x1077   : > { %v1841_v35 = vsel %vm1840_vm14, %v1836_v4, %v1839_v31  ;;  %v1846_v37 = vmul.f32 %v2441_v34, %v1837_v29 }
0x1078   : > { %v1844_v36 = vsel %vm1842_vm15, %v1843_v33, %v1841_v35 }
0x1079   : > { %v1852_v38 = vadd.f32 1e-06, %v1844_v36  ;;  %v1848_v40 = vsel %vm1847_vm0, %v1837_v29, %v1846_v37 }
0x107a   : > { %v1851_v41 = vsel %vm1849_vm1, %v1850_v39, %v1848_v40 }
0x107b   : > { %2442 = vrcp.f32 %v1852_v38  ;;  %v1853_v22 = vadd.f32 1e-06, %v1851_v41 }
0x107d   : > { %2444 = vrcp.f32 %v1853_v22 }
0x1085   : > { %v2443_v45 = vpop.eup %2442 }
0x1086   : > { %v1858_v47 = vmul.f32 %v2443_v45, %v1826_v21  ;;  %1875 = sbr.rel (%p2114_p10) target bundleno = 4239 (0x108f), region = 68 }
0x1087   : > { %v2445_v48 = vpop.eup %2444 }
0x1088   : > { %v1864_v49 = vmul.f32 %v1863_v44, %v1858_v47  ;;  %v1859_v50 = vmul.f32 %v2445_v48, %v1827_v23 }
0x108a   : > { %v1870_v51 = vadd.f32 %v1869_v46, %v1864_v49  ;;  %v1865_v52 = vmul.f32 %v1863_v44, %v1859_v50 }
0x108c   : > { %v1871_v53 = vadd.f32 %v1869_v46, %v1865_v52  ;;  %1876 = vst.msk [vmem:[#allocation2] sm:$0xff] (!%p2114_p10), %vm542_vm3, %v1870_v51 }
0x108e   : > { %1877 = vst.msk [vmem:[#allocation2 + $0x8] sm:$0xff] %vm542_vm3, %v1871_v53 }
0x108f PF: > { %1878 = vst.msk [vmem:[%s2765_s23] sm:$0xff] %vm542_vm3, %v1870_v51  ;;  %1879 = vst.msk [vmem:[%s2765_s23 + $0x8] sm:$0xff] %vm542_vm3, %v1871_v53  ;;  %s2124_s11 = sshll.u32 %s2548_s12, 8  ;;  %s1896_s22 = sshll.u32 %s2765_s23, 4  ;;  %s3012_s22 = int_to_ptr.vmem [resolvable:$true] %s1896_s22 }
0x1090   : > { %s3009_s17 = scalar_lea.hbm %s3072_s9, %s2124_s11  ;;  %s3105_s27 = sand.u32 1, %s2540_s10  }
0x1091   : > { %s3016_s26 = scalar_lea.sflag [#allocation7], %s3105_s27  ;;  %s2474_s25 = scalar_lea.vmem %s3012_s22, 256 }
0x1092   : > { %p2475_p11 = scmp.ne.s32.totalorder %s3012_s22, %s2474_s25  ;;  %p3106_p13 = scmp.ne.s32.totalorder %s3093_s19, 0 }
0x1093   : > { %s2577_s12 = smov [#allocation8]  }
0x1094   : > { %p2476_p1 = pnand %p2475_p11, %p3106_p13  ;;  %s2478_s18 = sshll.u32 %s2577_s12, 4  ;;  %s2479_s18 = int_to_ptr.vmem [resolvable:$false] %s2478_s18 }
0x1095   : > { %s2480_s20 = scalar_lea.vmem %s2479_s18, 512  ;;  %p2481_p5 = scmp.lt.s32.totalorder %s3012_s22, %s2479_s18 }
0x1096   : > { %p2477_p3 = pneg %p2476_p1  ;;  %p2482_p6 = scmp.lt.s32.totalorder %s2480_s20, %s2474_s25 }
0x1098   : > { %p2483_p7 = por %p2482_p6, %p2481_p5 }
0x109a   : > { %p2484_p9 = pnand %p2483_p7, %p2477_p3 }
0x109c   : > { %2487 = shalt.err (!%p2484_p9)
}
0x109d   : > { %s2488_s23 = scalar_lea.hbm %s3009_s17, 256  ;;  %s2492_s30 = scalar_lea.hbm %s3072_s9, 512 }
0x109e   : > { %p2489_p12 = scmp.ne.s32.totalorder %s3009_s17, %s2488_s23  ;;  %p2493_p4 = scmp.lt.u32.totalorder %s3009_s17, %s3072_s9 }
0x109f   : > { %p2494_p8 = scmp.lt.u32.totalorder %s2492_s30, %s2488_s23  ;;  %p2496_p11 = scmp.lt.u32.totalorder %s2488_s23, %s3009_s17 }
0x10a0   : > { %p2490_p0 = pnand %p2489_p12, %p3106_p13 }
0x10a1   : > { %p2495_p10 = por %p2494_p8, %p2493_p4 }
0x10a2   : > { %p2491_p2 = pneg %p2490_p0 }
0x10a3   : > { %p2497_p1 = por %p2496_p11, %p2495_p10 }
0x10a5   : > { %p2498_p3 = pnand %p2497_p1, %p2491_p2 }
0x10a7   : > { %2501 = shalt.err (!%p2498_p3)
}
0x10a8   : > { %s2578_s3 = smov 128  }
0x10a9   : > { %2307 = dma.vmem_to_hbm [thread:$0]  (%p3106_p13), %s3012_s22, 256, %s3009_s17, %s3016_s26, %s2578_s3, %s2578_s3, %s2574_s21  }
0x10aa PF: > { %s3107_s14 = sld [smem:[#allocation14_spill]]  ;;  %s3108_s0 = sld [smem:[#allocation11_spill]] }
0x10ab   : > { %s3109_s15 = sld [smem:[#allocation16_spill]] }
0x10b0   : > { %p2319_p5 = scmp.ge.s32.totalorder %s3107_s14, 2  ;;  %s1911_s11 = sand.u32 1, %s3108_s0  }
0x10b1   : > { %p3110_p6 = scmp.ne.s32.totalorder %s3109_s15, 0  ;;  %s1912_s16 = scalar_lea.sflag [#allocation7], %s1911_s11 }
0x10b3   : > { %p2314_p7 = pnand %p2319_p5, %p3110_p6 }
0x10b5   : > { %2531 = dma.done.wait (!%p2314_p7), %s1912_s16, 256  }
0x10b6   : > { %2533 = vsyncadd (!%p2314_p7), %s1912_s16, 4294967040  ;;  %s23_s14 = sadd.s32 1, %s3107_s14   ;;  %s3111_s19 = sld [smem:[#allocation12_spill]] }
0x10b7   : > { %p20_p9 = scmp.ge.s32.totalorder %s23_s14, 4   ;;  %s3112_s11 = sld [smem:[#allocation17_spill]] }
0x10b8   : > { %s3113_s12 = sld [smem:[#allocation13_spill]]  ;;  %s3114_s13 = sld [smem:[#allocation15_spill]] }
0x10b9   : > { %s3115_s30 = smov %s2540_s10  ;;  %22 = sbr.rel (!%p20_p9) target bundleno = 9 (0x9), region = 126 }
0x10bc   : > { %s3116_s10 = smov %s3111_s19 }
0x10c0   :  { %1917 = vsyncpa [#allocation6], 1 }
0x10c1   :  { %1919 = vsyncpa [#allocation6 + $0x1], 1 }
0x10c2   :  { %1920 = vsyncpa [#allocation7], 1 }
0x10c3   :  { %1922 = vsyncpa [#allocation7 + $0x1], 1 }

</bundles_post_ra>
